<compile_context>
chip_gen: v7x
topology: tpu7x:2x2x1
jax: 0.10.0
libtpu: 0.0.40
codegen_flags: <defaults>
</compile_context>

<pallas_src>
import jax
import jax.numpy as jnp
from jax import lax
from jax.experimental import pallas as pl
from jax.experimental.pallas import tpu as pltpu

# Per-tile logit spread above which the shared-exp rank-1 rescale of the column
# sums could leave the f32 normal range; beyond it we pay an exact second exp.
_SAFE_SPREAD = 80.0


def _clip_loss_kernel(scale_ref, img_ref, txt_ref,
                      row_lse_ref, col_max_ref, col_sum_ref,
                      img_s_ref, row_max_ref, row_sum_ref, spread_ref):
    j = pl.program_id(1)
    nj = pl.num_programs(1)

    # ---- per-row-sweep init -------------------------------------------------
    # Hoist the logit_scale multiply off the (BM, BN) tile: scale the (BM, D)
    # image tile once per row sweep (f32 multiply, stored in the compute dtype
    # so the MXU still sees bf16 when enabled).
    @pl.when(j == 0)
    def _():
        scale = scale_ref[0]
        img_s_ref[...] = (img_ref[...].astype(jnp.float32) * scale).astype(
            img_s_ref.dtype)
        row_max_ref[...] = jnp.full_like(row_max_ref, -jnp.inf)
        row_sum_ref[...] = jnp.zeros_like(row_sum_ref)

    # ---- logits tile: (scale*img) @ txt.T, f32 accumulation ------------------
    logits = lax.dot_general(img_s_ref[...], txt_ref[...],
                             dimension_numbers=(((1,), (1,)), ((), ())),
                             preferred_element_type=jnp.float32)   # (BM, BN)

    tr = jnp.max(logits, axis=1, keepdims=True)     # (BM, 1) tile row max
    tc = jnp.max(logits, axis=0, keepdims=True)     # (1, BN) tile col max
    p = jnp.exp(logits - tr)                        # the single full-tile exp

    # ---- online row-LSE update (exact, flash-style) --------------------------
    old_rm = row_max_ref[...]
    new_rm = jnp.maximum(old_rm, tr)
    new_rs = (row_sum_ref[...] * jnp.exp(old_rm - new_rm)
              + jnp.sum(p, axis=1, keepdims=True) * jnp.exp(tr - new_rm))
    row_max_ref[...] = new_rm
    row_sum_ref[...] = new_rs

    @pl.when(j == nj - 1)
    def _():
        row_lse_ref[...] = new_rm + jnp.log(new_rs)

    # ---- per-tile column stats (merged across row tiles in the wrapper) ------
    col_max_ref[...] = tc[None]                     # (1, 1, BN)

    c = jnp.max(tr, axis=0, keepdims=True)          # (1, 1) shared tile max
    # Round-trip the spread through a (1,1) VMEM scratch so pl.when sees a
    # plain scalar load (no vector->scalar extraction needed).
    spread_ref[...] = c - jnp.min(tc, axis=1, keepdims=True)

    @pl.when(spread_ref[0, 0] < _SAFE_SPREAD)
    def _():
        # Shared-exp fast path: p * exp(tr - c) == exp(logits - c).  With the
        # spread below ~80 nothing over/underflows, and anything that could
        # underflow contributes < e^-23 relative to its column max anyway.
        q = p * jnp.exp(tr - c)                                        # (BM, BN)
        col_sum_ref[...] = (jnp.sum(q, axis=0, keepdims=True)
                            * jnp.exp(c - tc))[None]

    @pl.when(spread_ref[0, 0] >= _SAFE_SPREAD)
    def _():
        # Exact fallback for extreme per-tile logit spread (huge logit_scale /
        # unnormalized features): pay the second full-tile exp.
        col_sum_ref[...] = jnp.sum(jnp.exp(logits - tc), axis=0,
                                   keepdims=True)[None]


def _pick_block(n, preferred):
    for b in preferred:
        if n % b == 0:
            return b
    # Largest multiple-of-8 divisor of n not exceeding the preferred cap.
    start = min(max(preferred), n)
    start -= start % 8
    for b in range(start, 7, -8):
        if n % b == 0:
            return b
    if n <= 2048:
        return n  # tiny / odd N: single full tile
    raise ValueError(
        f"no suitable tile size for batch {n}; pad N to a multiple of 128")


def clip_loss(image_features, text_features, logit_scale, *,
              block_m=None, block_n=None, use_bf16=True):
    """ClipLoss forward (local / single-device path). Returns an f32 scalar.

    image_features, text_features: [N, D]; logit_scale: scalar.
    """
    n, d = image_features.shape
    assert text_features.shape == (n, d)
    bm = block_m if block_m is not None else _pick_block(n, (1024, 512, 256, 128))
    bn = block_n if block_n is not None else _pick_block(n, (256, 128))
    assert n % bm == 0 and n % bn == 0, "batch must be divisible by the tile sizes"
    ni, nj = n // bm, n // bn

    scale = jnp.asarray(logit_scale, jnp.float32).reshape(1)

    # Diagonal ("correct-class") logits, shared by both CE terms: O(N*D) f32
    # epilogue computed from the original (un-quantized) features.
    diag = scale[0] * jnp.sum(image_features.astype(jnp.float32)
                              * text_features.astype(jnp.float32), axis=-1)

    img, txt = image_features, text_features
    if use_bf16 and img.dtype == jnp.float32:
        img = img.astype(jnp.bfloat16)   # halves DMA bytes; bf16-native MXU feed
        txt = txt.astype(jnp.bfloat16)
    cdt = img.dtype

    row_lse, col_max, col_sum = pl.pallas_call(
        _clip_loss_kernel,
        out_shape=(
            jax.ShapeDtypeStruct((n, 1), jnp.float32),       # per-row LSE
            jax.ShapeDtypeStruct((ni, 1, n), jnp.float32),   # per-row-tile col max
            jax.ShapeDtypeStruct((ni, 1, n), jnp.float32),   # per-row-tile col sum
        ),
        grid=(ni, nj),
        in_specs=[
            pl.BlockSpec(memory_space=pltpu.SMEM),           # logit_scale (1,)
            pl.BlockSpec((bm, d), lambda i, j: (i, 0)),      # image row tile
            pl.BlockSpec((bn, d), lambda i, j: (j, 0)),      # text  col tile
        ],
        out_specs=(
            pl.BlockSpec((bm, 1), lambda i, j: (i, 0)),
            pl.BlockSpec((1, 1, bn), lambda i, j: (i, 0, j)),
            pl.BlockSpec((1, 1, bn), lambda i, j: (i, 0, j)),
        ),
        scratch_shapes=[
            pltpu.VMEM((bm, d), cdt),            # scale-folded image tile
            pltpu.VMEM((bm, 1), jnp.float32),    # running row max
            pltpu.VMEM((bm, 1), jnp.float32),    # running row sum
            pltpu.VMEM((1, 1), jnp.float32),     # per-tile spread (branch scalar)
        ],
        compiler_params=pltpu.CompilerParams(
            # Row-tile axis carries no cross-step state -> megacore / dual-TC
            # shardable; the col axis carries the online row-LSE scratch.
            dimension_semantics=("parallel", "arbitrary"),
            vmem_limit_bytes=48 * 1024 * 1024,
        ),
    )(scale, img, txt)

    # Tiny O(ni*N) epilogue: merge the per-row-tile column stats into col-LSE.
    cm = col_max[:, 0, :]                                   # (ni, N)
    cs = col_sum[:, 0, :]
    m = jnp.max(cm, axis=0)                                 # (N,)
    col_lse = m + jnp.log(jnp.sum(cs * jnp.exp(cm - m[None, :]), axis=0))

    return (0.5 * (jnp.mean(row_lse[:, 0]) + jnp.mean(col_lse))
            - jnp.mean(diag))


def clip_loss_ref(image_features, text_features, logit_scale):
    """Pure-JAX reference mirroring the PyTorch forward (true f32 matmul)."""
    hi = jax.lax.Precision.HIGHEST
    img = image_features.astype(jnp.float32)
    txt = text_features.astype(jnp.float32)
    logits_i = logit_scale * jnp.matmul(img, txt.T, precision=hi)
    logits_t = logits_i.T

    def ce(logits):
        lse = jax.scipy.special.logsumexp(logits, axis=1)
        return jnp.mean(lse - jnp.diagonal(logits))

    return 0.5 * (ce(logits_i) + ce(logits_t))


if __name__ == "__main__":
    key = jax.random.PRNGKey(0)
    k1, k2 = jax.random.split(key)

    def unit(x):
        return x / jnp.linalg.norm(x, axis=-1, keepdims=True)

    scale = jnp.float32(2.5)

    # 1) f32 exact path over a 2x2 tile grid.
    N, D = 256, 128
    img = unit(jax.random.normal(k1, (N, D), dtype=jnp.float32))
    txt = unit(jax.random.normal(k2, (N, D), dtype=jnp.float32))
    out = jax.block_until_ready(
        clip_loss(img, txt, scale, block_m=128, block_n=128, use_bf16=False))
    ref = clip_loss_ref(img, txt, scale)
    assert jnp.allclose(out, ref, rtol=2e-3, atol=2e-3), (out, ref)

    # 2) asymmetric tiles (BM != BN), f32.
    N2, D2 = 512, 64
    img2 = unit(jax.random.normal(k1, (N2, D2), dtype=jnp.float32))
    txt2 = unit(jax.random.normal(k2, (N2, D2), dtype=jnp.float32))
    out2 = jax.block_until_ready(
        clip_loss(img2, txt2, scale, block_m=256, block_n=128, use_bf16=False))
    ref2 = clip_loss_ref(img2, txt2, scale)
    assert jnp.allclose(out2, ref2, rtol=2e-3, atol=2e-3), (out2, ref2)

    # 3) bf16 fast path (default), looser tolerance vs the f32 reference.
    out3 = jax.block_until_ready(
        clip_loss(img, txt, scale, block_m=128, block_n=128))
    assert jnp.allclose(out3, ref, rtol=1e-2, atol=1e-2), (out3, ref)

    # 4) large per-tile logit spread -> exercises the exact column-sum fallback.
    imgU = jax.random.normal(k1, (N, D), dtype=jnp.float32)   # unnormalized
    txtU = jax.random.normal(k2, (N, D), dtype=jnp.float32)
    big = jnp.float32(10.0)
    out4 = jax.block_until_ready(
        clip_loss(imgU, txtU, big, block_m=128, block_n=128, use_bf16=False))
    ref4 = clip_loss_ref(imgU, txtU, big)
    assert jnp.allclose(out4, ref4, rtol=5e-3, atol=5e-3), (out4, ref4)

    # 5) tiny single-tile fallback shape.
    N5, D5 = 8, 32
    img5 = jax.random.normal(k1, (N5, D5), dtype=jnp.float32)
    txt5 = jax.random.normal(k2, (N5, D5), dtype=jnp.float32)
    out5 = jax.block_until_ready(clip_loss(img5, txt5, scale, use_bf16=False))
    ref5 = clip_loss_ref(img5, txt5, scale)
    assert jnp.allclose(out5, ref5, rtol=2e-3, atol=2e-3), (out5, ref5)

    print("KERNEL_OK")
</pallas_src>

<mosaic_0001>
module attributes {stable_mosaic.version = 11 : i64} {
  func.func @_clip_loss_kernel(%arg0: i32, %arg1: i32, %arg2: memref<1xf32, #tpu.memory_space<smem>>, %arg3: memref<128x128xf32, #tpu.memory_space<vmem>>, %arg4: memref<128x128xf32, #tpu.memory_space<vmem>>, %arg5: memref<128x1xf32, #tpu.memory_space<vmem>>, %arg6: memref<1x1x128xf32, #tpu.memory_space<vmem>>, %arg7: memref<1x1x128xf32, #tpu.memory_space<vmem>>, %arg8: memref<128x128xf32, #tpu.memory_space<vmem>>, %arg9: memref<128x1xf32, #tpu.memory_space<vmem>>, %arg10: memref<128x1xf32, #tpu.memory_space<vmem>>, %arg11: memref<1x1xf32, #tpu.memory_space<vmem>>) attributes {dimension_semantics = [#tpu.dimension_semantics<parallel>, #tpu.dimension_semantics<arbitrary>], iteration_bounds = array<i64: 2, 2>, scalar_prefetch = 0 : i64, scratch_operands = 4 : i64, tpu.core_type = #tpu.core_type<tc>, window_params = [{transform_indices = @transform_0, window_bounds = array<i64: 1>}, {transform_indices = @transform_1, window_bounds = array<i64: 128, 128>}, {transform_indices = @transform_2, window_bounds = array<i64: 128, 128>}, {transform_indices = @transform_3, window_bounds = array<i64: 128, 1>}, {transform_indices = @transform_4, window_bounds = array<i64: 1, 1, 128>}, {transform_indices = @transform_5, window_bounds = array<i64: 1, 1, 128>}]} {
    %c0_i32 = arith.constant 0 : i32
    %0 = arith.cmpi eq, %arg1, %c0_i32 : i32
    %1 = arith.extui %0 : i1 to i32
    %c0_i32_0 = arith.constant 0 : i32
    %2 = arith.cmpi ne, %1, %c0_i32_0 : i32
    scf.if %2 {
      %c0_31 = arith.constant 0 : index
      %48 = memref.load %arg2[%c0_31] : memref<1xf32, #tpu.memory_space<smem>>
      %c0_32 = arith.constant 0 : index
      %c0_33 = arith.constant 0 : index
      %49 = vector.load %arg3[%c0_32, %c0_33] : memref<128x128xf32, #tpu.memory_space<vmem>>, vector<128x128xf32>
      %50 = vector.broadcast %48 : f32 to vector<128x128xf32>
      %51 = arith.mulf %49, %50 : vector<128x128xf32>
      %c0_34 = arith.constant 0 : index
      %c0_35 = arith.constant 0 : index
      %52 = vector.load %arg8[%c0_34, %c0_35] : memref<128x128xf32, #tpu.memory_space<vmem>>, vector<128x128xf32>
      tpu.vector_store %arg8[%c0_34, %c0_35], %51 {strides = array<i32>} : memref<128x128xf32, #tpu.memory_space<vmem>>, vector<128x128xf32>,
      %cst_36 = arith.constant 0xFF800000 : f32
      %53 = vector.broadcast %cst_36 : f32 to vector<128x1xf32>
      %c0_37 = arith.constant 0 : index
      %c0_38 = arith.constant 0 : index
      %54 = vector.load %arg9[%c0_37, %c0_38] : memref<128x1xf32, #tpu.memory_space<vmem>>, vector<128x1xf32>
      tpu.vector_store %arg9[%c0_37, %c0_38], %53 {strides = array<i32>} : memref<128x1xf32, #tpu.memory_space<vmem>>, vector<128x1xf32>,
      %cst_39 = arith.constant 0.000000e+00 : f32
      %55 = vector.broadcast %cst_39 : f32 to vector<128x1xf32>
      %c0_40 = arith.constant 0 : index
      %c0_41 = arith.constant 0 : index
      %56 = vector.load %arg10[%c0_40, %c0_41] : memref<128x1xf32, #tpu.memory_space<vmem>>, vector<128x1xf32>
      tpu.vector_store %arg10[%c0_40, %c0_41], %55 {strides = array<i32>} : memref<128x1xf32, #tpu.memory_space<vmem>>, vector<128x1xf32>,
    } else {
    }
    %c0 = arith.constant 0 : index
    %c0_1 = arith.constant 0 : index
    %3 = vector.load %arg8[%c0, %c0_1] : memref<128x128xf32, #tpu.memory_space<vmem>>, vector<128x128xf32>
    %c0_2 = arith.constant 0 : index
    %c0_3 = arith.constant 0 : index
    %4 = vector.load %arg4[%c0_2, %c0_3] : memref<128x128xf32, #tpu.memory_space<vmem>>, vector<128x128xf32>
    %cst = arith.constant dense<0.000000e+00> : vector<128x128xf32>
    %5 = tpu.matmul %3, %4, %cst {dimension_numbers = #tpu.dot_dimension_numbers<[1], [1], [0], [0], [0, 0, 1, 0], [], []>} : vector<128x128xf32>, vector<128x128xf32>, vector<128x128xf32> -> vector<128x128xf32>
    %cst_4 = arith.constant dense<0xFF800000> : vector<128xf32>
    %6 = vector.multi_reduction <maximumf>, %5, %cst_4 [1] : vector<128x128xf32> to vector<128xf32>
    %7 = vector.shape_cast %6 : vector<128xf32> to vector<128x1xf32>
    %cst_5 = arith.constant dense<0xFF800000> : vector<128xf32>
    %8 = vector.multi_reduction <maximumf>, %5, %cst_5 [0] : vector<128x128xf32> to vector<128xf32>
    %9 = vector.shape_cast %8 : vector<128xf32> to vector<1x128xf32>
    %10 = vector.broadcast %7 : vector<128x1xf32> to vector<128x128xf32>
    %11 = arith.subf %5, %10 : vector<128x128xf32>
    %12 = math.exp %11 : vector<128x128xf32>
    %c0_6 = arith.constant 0 : index
    %c0_7 = arith.constant 0 : index
    %13 = vector.load %arg9[%c0_6, %c0_7] : memref<128x1xf32, #tpu.memory_space<vmem>>, vector<128x1xf32>
    %14 = arith.maximumf %13, %7 : vector<128x1xf32>
    %c0_8 = arith.constant 0 : index
    %c0_9 = arith.constant 0 : index
    %15 = vector.load %arg10[%c0_8, %c0_9] : memref<128x1xf32, #tpu.memory_space<vmem>>, vector<128x1xf32>
    %16 = arith.subf %13, %14 : vector<128x1xf32>
    %17 = math.exp %16 : vector<128x1xf32>
    %18 = arith.mulf %15, %17 : vector<128x1xf32>
    %cst_10 = arith.constant dense<0.000000e+00> : vector<128xf32>
    %19 = vector.multi_reduction <add>, %12, %cst_10 [1] : vector<128x128xf32> to vector<128xf32>
    %20 = vector.shape_cast %19 : vector<128xf32> to vector<128x1xf32>
    %21 = arith.subf %7, %14 : vector<128x1xf32>
    %22 = math.exp %21 : vector<128x1xf32>
    %23 = arith.mulf %20, %22 : vector<128x1xf32>
    %24 = arith.addf %18, %23 : vector<128x1xf32>
    %c0_11 = arith.constant 0 : index
    %c0_12 = arith.constant 0 : index
    %25 = vector.load %arg9[%c0_11, %c0_12] : memref<128x1xf32, #tpu.memory_space<vmem>>, vector<128x1xf32>
    tpu.vector_store %arg9[%c0_11, %c0_12], %14 {strides = array<i32>} : memref<128x1xf32, #tpu.memory_space<vmem>>, vector<128x1xf32>,
    %c0_13 = arith.constant 0 : index
    %c0_14 = arith.constant 0 : index
    %26 = vector.load %arg10[%c0_13, %c0_14] : memref<128x1xf32, #tpu.memory_space<vmem>>, vector<128x1xf32>
    tpu.vector_store %arg10[%c0_13, %c0_14], %24 {strides = array<i32>} : memref<128x1xf32, #tpu.memory_space<vmem>>, vector<128x1xf32>,
    %c1_i32 = arith.constant 1 : i32
    %27 = arith.cmpi eq, %arg1, %c1_i32 : i32
    %28 = arith.extui %27 : i1 to i32
    %c0_i32_15 = arith.constant 0 : i32
    %29 = arith.cmpi ne, %28, %c0_i32_15 : i32
    scf.if %29 {
      %48 = math.log %24 : vector<128x1xf32>
      %49 = arith.addf %14, %48 : vector<128x1xf32>
      %c0_31 = arith.constant 0 : index
      %c0_32 = arith.constant 0 : index
      %50 = vector.load %arg5[%c0_31, %c0_32] : memref<128x1xf32, #tpu.memory_space<vmem>>, vector<128x1xf32>
      tpu.vector_store %arg5[%c0_31, %c0_32], %49 {strides = array<i32>} : memref<128x1xf32, #tpu.memory_space<vmem>>, vector<128x1xf32>,
    } else {
    }
    %30 = vector.shape_cast %9 : vector<1x128xf32> to vector<1x1x128xf32>
    %c0_16 = arith.constant 0 : index
    %c0_17 = arith.constant 0 : index
    %c0_18 = arith.constant 0 : index
    %31 = vector.load %arg6[%c0_16, %c0_17, %c0_18] : memref<1x1x128xf32, #tpu.memory_space<vmem>>, vector<1x1x128xf32>
    tpu.vector_store %arg6[%c0_16, %c0_17, %c0_18], %30 {strides = array<i32>} : memref<1x1x128xf32, #tpu.memory_space<vmem>>, vector<1x1x128xf32>,
    %cst_19 = arith.constant dense<0xFF800000> : vector<1xf32>
    %32 = vector.multi_reduction <maximumf>, %7, %cst_19 [0] : vector<128x1xf32> to vector<1xf32>
    %33 = vector.shape_cast %32 : vector<1xf32> to vector<1x1xf32>
    %cst_20 = arith.constant dense<0x7F800000> : vector<1xf32>
    %34 = vector.multi_reduction <minimumf>, %9, %cst_20 [1] : vector<1x128xf32> to vector<1xf32>
    %35 = vector.shape_cast %34 : vector<1xf32> to vector<1x1xf32>
    %36 = arith.subf %33, %35 : vector<1x1xf32>
    %c0_21 = arith.constant 0 : index
    %c0_22 = arith.constant 0 : index
    %37 = vector.load %arg11[%c0_21, %c0_22] : memref<1x1xf32, #tpu.memory_space<vmem>>, vector<1x1xf32>
    tpu.vector_store %arg11[%c0_21, %c0_22], %36 {strides = array<i32>} : memref<1x1xf32, #tpu.memory_space<vmem>>, vector<1x1xf32>,
    %c0_23 = arith.constant 0 : index
    %c0_24 = arith.constant 0 : index
    %38 = vector.load %arg11[%c0_23, %c0_24] : memref<1x1xf32, #tpu.memory_space<vmem>>, vector<1x1xf32>
    %39 = vector.extract %38[0, 0] : f32 from vector<1x1xf32>
    %cst_25 = arith.constant 8.000000e+01 : f32
    %40 = arith.cmpf olt, %39, %cst_25 : f32
    %41 = arith.extui %40 : i1 to i32
    %c0_i32_26 = arith.constant 0 : i32
    %42 = arith.cmpi ne, %41, %c0_i32_26 : i32
    scf.if %42 {
      %48 = vector.broadcast %33 : vector<1x1xf32> to vector<128x1xf32>
      %49 = arith.subf %7, %48 : vector<128x1xf32>
      %50 = math.exp %49 : vector<128x1xf32>
      %51 = vector.broadcast %50 : vector<128x1xf32> to vector<128x128xf32>
      %52 = arith.mulf %12, %51 : vector<128x128xf32>
      %cst_31 = arith.constant dense<0.000000e+00> : vector<128xf32>
      %53 = vector.multi_reduction <add>, %52, %cst_31 [0] : vector<128x128xf32> to vector<128xf32>
      %54 = vector.shape_cast %53 : vector<128xf32> to vector<1x128xf32>
      %55 = vector.broadcast %33 : vector<1x1xf32> to vector<1x128xf32>
      %56 = arith.subf %55, %9 : vector<1x128xf32>
      %57 = math.exp %56 : vector<1x128xf32>
      %58 = arith.mulf %54, %57 : vector<1x128xf32>
      %59 = vector.shape_cast %58 : vector<1x128xf32> to vector<1x1x128xf32>
      %c0_32 = arith.constant 0 : index
      %c0_33 = arith.constant 0 : index
      %c0_34 = arith.constant 0 : index
      %60 = vector.load %arg7[%c0_32, %c0_33, %c0_34] : memref<1x1x128xf32, #tpu.memory_space<vmem>>, vector<1x1x128xf32>
      tpu.vector_store %arg7[%c0_32, %c0_33, %c0_34], %59 {strides = array<i32>} : memref<1x1x128xf32, #tpu.memory_space<vmem>>, vector<1x1x128xf32>,
    } else {
    }
    %c0_27 = arith.constant 0 : index
    %c0_28 = arith.constant 0 : index
    %43 = vector.load %arg11[%c0_27, %c0_28] : memref<1x1xf32, #tpu.memory_space<vmem>>, vector<1x1xf32>
    %44 = vector.extract %43[0, 0] : f32 from vector<1x1xf32>
    %cst_29 = arith.constant 8.000000e+01 : f32
    %45 = arith.cmpf oge, %44, %cst_29 : f32
    %46 = arith.extui %45 : i1 to i32
    %c0_i32_30 = arith.constant 0 : i32
    %47 = arith.cmpi ne, %46, %c0_i32_30 : i32
    scf.if %47 {
      %48 = vector.broadcast %9 : vector<1x128xf32> to vector<128x128xf32>
      %49 = arith.subf %5, %48 : vector<128x128xf32>
      %50 = math.exp %49 : vector<128x128xf32>
      %cst_31 = arith.constant dense<0.000000e+00> : vector<128xf32>
      %51 = vector.multi_reduction <add>, %50, %cst_31 [0] : vector<128x128xf32> to vector<128xf32>
      %52 = vector.shape_cast %51 : vector<128xf32> to vector<1x128xf32>
      %53 = vector.shape_cast %52 : vector<1x128xf32> to vector<1x1x128xf32>
      %c0_32 = arith.constant 0 : index
      %c0_33 = arith.constant 0 : index
      %c0_34 = arith.constant 0 : index
      %54 = vector.load %arg7[%c0_32, %c0_33, %c0_34] : memref<1x1x128xf32, #tpu.memory_space<vmem>>, vector<1x1x128xf32>
      tpu.vector_store %arg7[%c0_32, %c0_33, %c0_34], %53 {strides = array<i32>} : memref<1x1x128xf32, #tpu.memory_space<vmem>>, vector<1x1x128xf32>,
    } else {
    }
    return
  }
  func.func @transform_0(%arg0: i32, %arg1: i32) -> i32 {
    %c0_i32 = arith.constant 0 : i32
    %c0_i32_0 = arith.constant 0 : i32
    return %c0_i32 : i32
  }
  func.func @transform_1(%arg0: i32, %arg1: i32) -> (i32, i32) {
    %c0_i32 = arith.constant 0 : i32
    %c0_i32_0 = arith.constant 0 : i32
    return %arg0, %c0_i32 : i32, i32
  }
  func.func @transform_2(%arg0: i32, %arg1: i32) -> (i32, i32) {
    %c0_i32 = arith.constant 0 : i32
    %c0_i32_0 = arith.constant 0 : i32
    return %arg1, %c0_i32 : i32, i32
  }
  func.func @transform_3(%arg0: i32, %arg1: i32) -> (i32, i32) {
    %c0_i32 = arith.constant 0 : i32
    %c0_i32_0 = arith.constant 0 : i32
    return %arg0, %c0_i32 : i32, i32
  }
  func.func @transform_4(%arg0: i32, %arg1: i32) -> (i32, i32, i32) {
    %c0_i32 = arith.constant 0 : i32
    %c0_i32_0 = arith.constant 0 : i32
    return %arg0, %c0_i32, %arg1 : i32, i32, i32
  }
  func.func @transform_5(%arg0: i32, %arg1: i32) -> (i32, i32, i32) {
    %c0_i32 = arith.constant 0 : i32
    %c0_i32_0 = arith.constant 0 : i32
    return %arg0, %c0_i32, %arg1 : i32, i32, i32
  }
}

</mosaic_0001>

<bundles_post_ra>
// kernel: tpu_custom_call.1
= control target key start
LH: loop header
LB: loop body
LE: loop exit
PB: predicated region body
PF: predicated region fallthrough
CT: control target
= control target key end

     0   :  { %s3324_s0 = inlined_call_operand.<no memory space> [shape: f32[1], index: 0, kind: input, shape index: {}]   ;;  %s3325_s1 = inlined_call_operand.hbm [shape: f32[256,128], index: 1, kind: input, shape index: {}]   ;;  %s3326_s2 = inlined_call_operand.hbm [shape: f32[256,128], index: 2, kind: input, shape index: {}]   ;;  %s3327_s3 = inlined_call_operand.vmem [shape: f32[256,1], index: 3, kind: output, shape index: {0}]   ;;  %s3328_s4 = inlined_call_operand.hbm [shape: f32[2,1,256], index: 4, kind: output, shape index: {1}]   ;;  %s3329_s5 = inlined_call_operand.hbm [shape: f32[2,1,256], index: 5, kind: output, shape index: {2}]  }
   0x1   :  { %3381 = sst [smem:[#allocation59_spill]] %s3325_s1 }
   0x2   :  { %3382 = sst [smem:[#allocation60_spill]] %s3326_s2 }
   0x3   :  { %3383 = sst [smem:[#allocation61_spill]] %s3327_s3 }
   0x4   :  { %3384 = sst [smem:[#allocation62_spill]] %s3328_s4 }
   0x5   :  { %3385 = sst [smem:[#allocation63_spill]] %s3329_s5 }
   0x6   :  { %11 = sst [smem:[#allocation6]] %s3324_s0 }
   0x7   :  { %12 = vsyncpa [#allocation8], 0 }
   0x8   :  { %14 = vsyncpa [#allocation8 + $0x1], 0 }
   0x9   :  { %15 = vsyncpa [#allocation11], 0 }
   0xa   :  { %17 = vsyncpa [#allocation11 + $0x1], 0 }
   0xb   :  { %18 = vsyncpa [#allocation9], 0 }
   0xc   :  { %20 = vsyncpa [#allocation9 + $0x1], 0 }
   0xd   :  { %21 = vsyncpa [#allocation14], 0 }
   0xe   :  { %23 = vsyncpa [#allocation14 + $0x1], 0  ;;  %s2197_s20 = smov 0   ;;  %s2199_s21 = smov 0  }
   0xf   :  { %s2201_s22 = smov 0   ;;  %s2203_s23 = smov 0  }
  0x10   :  { %s2205_s24 = smov 0   ;;  %s2207_s25 = smov 0  }
  0x11   :  { %s2209_s0 = smov 0   ;;  %s2211_s26 = smov 0  }
  0x12   :  { %s2213_s27 = smov 0   ;;  %s2215_s28 = smov 0  }
  0x13   :  { %s2217_s29 = smov 0   ;;  %s2219_s30 = smov 0  }
  0x14   :  { %s2221_s6 = smov 0   ;;  %s2223_s7 = smov 0  }
  0x15 LB: > { %3386 = sst [smem:[#allocation19_spill]] %s2146_s30  ;;  %s3330_s8 = sadd.s32 4294967295, %s2154_s7   ;;  %s2154_s7 = sphi %s2223_s7, %s29_s7   ;;  %s2150_s6 = sphi %s2221_s6, %s3527_s6   ;;  %s2146_s30 = sphi %s2219_s30, %s3526_s30   ;;  %s2142_s29 = sphi %s2217_s29, %s3525_s29   ;;  %s2138_s28 = sphi %s2215_s28, %s3524_s28   ;;  %s2134_s27 = sphi %s2213_s27, %s3536_s27   ;;  %s2130_s26 = sphi %s2211_s26, %s3535_s26   ;;  %s2126_s0 = sphi %s2209_s0, %s3534_s0   ;;  %s2122_s25 = sphi %s2207_s25, %s3533_s25   ;;  %s2118_s24 = sphi %s2205_s24, %s3532_s24   ;;  %s2114_s23 = sphi %s2203_s23, %s3531_s23   ;;  %s2110_s22 = sphi %s2201_s22, %s3530_s22   ;;  %s2106_s21 = sphi %s2199_s21, %s3529_s21   ;;  %s2102_s20 = sphi %s2197_s20, %s3528_s20  }
  0x16   : > { %3387 = sst [smem:[#allocation20_spill]] %s2150_s6  ;;  %p76_p0 = scmp.ne.s32.totalorder %s2134_s27, %s2130_s26 }
  0x17   : > { %p3332_p1 = scmp.eq.s32.totalorder %s2154_s7, 0  ;;  %p82_p2 = scmp.ne.s32.totalorder %s2130_s26, %s2126_s0 }
  0x18   : > { %p2274_p3 = scmp.eq.s32.totalorder %s3330_s8, 0  ;;  %p3331_p6 = scmp.lt.s32.totalorder %s2154_s7, 4 }
  0x19   : > { %p78_p4 = por %p3332_p1, %p76_p0  ;;  %s217_s13 = sand.u32 1, %s2134_s27  }
  0x1a   : > { %p2282_p5 = por %p2274_p3, %p82_p2  ;;  %s1436_s14 = sshll.u32 %s2150_s6, 11 }
  0x1b   : > { %s1417_s15 = sshll.u32 %s217_s13, 7  ;;  %s3390_s1 = sld [smem:[#allocation59_spill]] }
  0x1c   : > { %s3389_s12 = scalar_select %p2282_p5, 1, 0 }
  0x1d   : > { %s221_s19 = scalar_lea.vmem [#allocation7], %s1417_s15  ;;  %p2296_p7 = pnand %p3331_p6, %p78_p4 }
  0x1e   : > { %s228_s0 = sshll.u32 %s221_s19, 4  ;;  %s2302_s9 = scalar_lea.sflag [#allocation8], %s217_s13  ;;  %s2300_s0 = int_to_ptr.vmem [resolvable:$true] %s228_s0 }
  0x1f   : > { %p1914_p9 = pneg %p2296_p7 }
  0x21   : > { %s2292_s18 = scalar_lea.hbm %s3390_s1, %s1436_s14  ;;  %s1917_s17 = scalar_lea.hbm %s3390_s1, 4096 }
  0x22   : > { %s1912_s16 = scalar_lea.hbm %s2292_s18, 2048  ;;  %p1918_p12 = scmp.lt.u32.totalorder %s2292_s18, %s3390_s1 }
  0x23   : > { %p1913_p8 = scmp.ne.s32.totalorder %s2292_s18, %s1912_s16  ;;  %p1919_p13 = scmp.lt.u32.totalorder %s1917_s17, %s1912_s16 }
  0x24   : > { %p1921_p2 = scmp.lt.u32.totalorder %s1912_s16, %s2292_s18 }
  0x25   : > { %p1915_p10 = pnand %p1914_p9, %p1913_p8  ;;  %p1920_p0 = por %p1919_p13, %p1918_p12 }
  0x27   : > { %p1916_p11 = pneg %p1915_p10  ;;  %p1922_p4 = por %p1921_p2, %p1920_p0 }
  0x29   : > { %p1923_p6 = pnand %p1922_p4, %p1916_p11 }
  0x2b   : > { %1926 = shalt.err (!%p1923_p6)
}
  0x2c   : > { %s1927_s13 = scalar_lea.vmem %s2300_s0, 2048  ;;  %s2156_s14 = smov [#allocation7]  }
  0x2d   : > { %p1928_p8 = scmp.ne.s32.totalorder %s2300_s0, %s1927_s13  ;;  %s1932_s15 = sshll.u32 %s2156_s14, 4  ;;  %s1933_s15 = int_to_ptr.vmem [resolvable:$false] %s1932_s15 }
  0x2e   : > { %s1934_s8 = scalar_lea.vmem %s1933_s15, 4096  ;;  %p1935_p5 = scmp.lt.s32.totalorder %s2300_s0, %s1933_s15 }
  0x2f   : > { %p1930_p10 = pnand %p1928_p8, %p1914_p9  ;;  %p1936_p12 = scmp.lt.s32.totalorder %s1934_s8, %s1927_s13 }
  0x31   : > { %p1931_p1 = pneg %p1930_p10  ;;  %p1937_p13 = por %p1936_p12, %p1935_p5 }
  0x33   : > { %p1938_p0 = pnand %p1937_p13, %p1931_p1 }
  0x35   : > { %1941 = shalt.err (!%p1938_p0)
}
  0x36   : > { %s3334_s16 = smov 128   ;;  %s3335_s17 = smov 8  }
  0x37   : > { %1589 = dma.hbm_to_vmem [thread:$0]  (!%p2296_p7), %s2292_s18, 2048, %s2300_s0, %s2302_s9, %s3334_s16, %s3334_s16, %s3335_s17  }
  0x38   : > { %p1423_p1 = scmp.ge.s32.totalorder %s2154_s7, 1  ;;  %p257_p5 = scmp.lt.s32.totalorder %s2154_s7, 5 }
  0x39   : > { %s3392_s19 = sadd.s32 4294967295, %s2154_s7   ;;  %s1414_s10 = sadd.s32 4294967294, %s2154_s7  }
  0x3a   : > { %p2337_p6 = scmp.eq.s32.totalorder %s3392_s19, 3  ;;  %p2341_p9 = pnand %p1423_p1, %p257_p5 }
  0x3b   : > { %s38_s15 = sadd.s32 1, %s2146_s30  ;;  %s95_s9 = sadd.s32 1, %s2122_s25 }
  0x3c   : > { %p39_p7 = scmp.ge.s32.totalorder %s38_s15, 2  ;;  %p102_p11 = scmp.ne.s32.totalorder %s2122_s25, %s2118_s24 }
  0x3d   : > { %p108_p2 = scmp.ne.s32.totalorder %s2118_s24, %s2114_s23  ;;  %s3396_s18 = sadd.s32 1, %s2150_s6 }
  0x3e   : > { %s3538_s15 = smov (%p39_p7, %s38_s15), 0  ;;  %s3540_s18 = smov (!%p39_p7, %s3396_s18), %s2150_s6 }
  0x3f   : > { %3395 = sst [smem:[#allocation21_spill]] %s3538_s15  ;;  %s92_s0 = ssub.s32 %s2146_s30, %s3538_s15 }
  0x40   : > { %s149_s8 = sadd.s32 1, %s2110_s22  ;;  %p43_p4 = scmp.ge.s32.totalorder %s3540_s18, 2 }
  0x41   : > { %p93_p8 = scmp.eq.s32.totalorder %s92_s0, 0  ;;  %p2362_p10 = por %p108_p2, %p2274_p3 }
  0x42   : > { %p159_p12 = scmp.ne.s32.totalorder %s2110_s22, %s2106_s21  ;;  %s3542_s18 = smov (%p43_p4, %s3540_s18), 0 }
  0x43   : > { %s3397_s23 = scalar_select %p2362_p10, 1, 0 }
  0x44   : > { %3398 = sst [smem:[#allocation22_spill]] %s3542_s18  ;;  %s66_s16 = ssub.s32 %s2150_s6, %s3542_s18 }
  0x45   : > { %s2371_s19 = scalar_select %p93_p8, %s2122_s25, %s95_s9  }
  0x46   : > { %p2377_p13 = por %p2337_p6, %p159_p12  ;;  %p67_p0 = scmp.eq.s32.totalorder %s66_s16, 0 }
  0x47   : > { %s146_s11 = sor.u32 %s92_s0, %s66_s16  ;;  %p165_p1 = scmp.ne.s32.totalorder %s2106_s21, %s2102_s20 }
  0x48   : > { %s3399_s17 = scalar_select %p2377_p13, 1, 0 }
  0x49   : > { %p147_p3 = scmp.eq.s32.totalorder %s146_s11, 0  ;;  %s3400_s1 = sadd.s32 1, %s2134_s27 }
  0x4a   : > { %s2386_s15 = scalar_select %p67_p0, %s2134_s27, %s3400_s1  }
  0x4b   : > { %s2389_s5 = scalar_select %p147_p3, %s2110_s22, %s149_s8  }
  0x4c   : > { %p166_p5 = scmp.eq.s32.totalorder %s1414_s10, 3  ;;  %s238_s4 = sand.u32 1, %s2122_s25  }
  0x4d   : > { %p3401_p7 = scmp.eq.s32.totalorder %s2154_s7, 0  ;;  %s1420_s13 = sshll.u32 %s238_s4, 7 }
  0x4e   : > { %p2397_p6 = por %p166_p5, %p165_p1  ;;  %s1437_s18 = sshll.u32 %s2146_s30, 11 }
  0x4f   : > { %p104_p2 = por %p102_p11, %p3401_p7  ;;  %s242_s6 = scalar_lea.vmem [#allocation10], %s1420_s13 }
  0x50   : > { %s3402_s9 = scalar_select %p2397_p6, 1, 0 }
  0x51   : > { %s249_s16 = sshll.u32 %s242_s6, 4  ;;  %s3403_s2 = sld [smem:[#allocation60_spill]]  ;;  %s2407_s16 = int_to_ptr.vmem [resolvable:$true] %s249_s16 }
  0x52   : > { %p3404_p11 = scmp.lt.s32.totalorder %s2154_s7, 4  ;;  %s2415_s8 = scalar_lea.sflag [#allocation11], %s238_s4 }
  0x54   : > { %p2411_p4 = pnand %p3404_p11, %p104_p2 }
  0x56   : > { %p1944_p12 = pneg %p2411_p4 }
  0x57   : > { %s2405_s1 = scalar_lea.hbm %s3403_s2, %s1437_s18  ;;  %s1947_s0 = scalar_lea.hbm %s3403_s2, 4096 }
  0x58   : > { %s1942_s6 = scalar_lea.hbm %s2405_s1, 2048  ;;  %p1948_p1 = scmp.lt.u32.totalorder %s2405_s1, %s3403_s2 }
  0x59   : > { %p1943_p8 = scmp.ne.s32.totalorder %s2405_s1, %s1942_s6  ;;  %p1949_p5 = scmp.lt.u32.totalorder %s1947_s0, %s1942_s6 }
  0x5a   : > { %p1951_p2 = scmp.lt.u32.totalorder %s1942_s6, %s2405_s1 }
  0x5b   : > { %p1945_p0 = pnand %p1944_p12, %p1943_p8  ;;  %p1950_p7 = por %p1949_p5, %p1948_p1 }
  0x5d   : > { %p1946_p3 = pneg %p1945_p0  ;;  %p1952_p11 = por %p1951_p2, %p1950_p7 }
  0x5f   : > { %p1953_p6 = pnand %p1952_p11, %p1946_p3 }
  0x61   : > { %1956 = shalt.err (!%p1953_p6)
}
  0x62   : > { %s1957_s4 = scalar_lea.vmem %s2407_s16, 2048  ;;  %s2159_s18 = smov [#allocation10]  }
  0x63   : > { %p1958_p8 = scmp.ne.s32.totalorder %s2407_s16, %s1957_s4  ;;  %s1962_s13 = sshll.u32 %s2159_s18, 4  ;;  %s1963_s13 = int_to_ptr.vmem [resolvable:$false] %s1962_s13 }
  0x64   : > { %s1964_s30 = scalar_lea.vmem %s1963_s13, 4096  ;;  %p1965_p10 = scmp.lt.s32.totalorder %s2407_s16, %s1963_s13 }
  0x65   : > { %p1960_p0 = pnand %p1958_p8, %p1944_p12  ;;  %p1966_p1 = scmp.lt.s32.totalorder %s1964_s30, %s1957_s4 }
  0x67   : > { %p1961_p13 = pneg %p1960_p0  ;;  %p1967_p5 = por %p1966_p1, %p1965_p10 }
  0x69   : > { %p1968_p7 = pnand %p1967_p5, %p1961_p13 }
  0x6b   : > { %1971 = shalt.err (!%p1968_p7)
}
  0x6c   : > { %s3406_s6 = smov 8   ;;  %s3407_s0 = smov 128  }
  0x6d   : > { %1592 = dma.hbm_to_vmem [thread:$0]  (!%p2411_p4), %s2405_s1, 2048, %s2407_s16, %s2415_s8, %s3407_s0, %s3407_s0, %s3406_s6  }
  0x6e   : > { %261 = sbr.rel (%p2341_p9) target bundleno = 1222 (0x4c6), region = 32 }
  0x75   : > { %s263_s11 = sand.u32 1, %s2130_s26   ;;  %p3408_p10 = scmp.ne.s32.totalorder %s3389_s12, 0 }
  0x76   : > { %s1424_s18 = sshll.u32 %s263_s11, 7  ;;  %s264_s4 = scalar_lea.sflag [#allocation8], %s263_s11 }
  0x77   : > { %s2449_s13 = scalar_lea.vmem [#allocation7], %s1424_s18 }
  0x78   : > { %2085 = dma.done.wait (%p3408_p10), %s264_s4, 2048  }
  0x79   : > { %2087 = vsyncadd (%p3408_p10), %s264_s4, 4294965248  ;;  %s272_s10 = sand.u32 1, %s2118_s24   ;;  %p3409_p9 = scmp.ne.s32.totalorder %s3397_s23, 0 }
  0x7a   : > { %s1425_s30 = sshll.u32 %s272_s10, 7  ;;  %s273_s16 = scalar_lea.sflag [#allocation11], %s272_s10 }
  0x7b   : > { %s2456_s1 = scalar_lea.vmem [#allocation10], %s1425_s30 }
  0x7c   : > { %2089 = dma.done.wait (%p3409_p9), %s273_s16, 2048  }
  0x7d   : > { %2091 = vsyncadd (%p3409_p9), %s273_s16, 4294965248  ;;  %s2463_s14 = sand.u32 1, %s2106_s21   ;;  %s1426_s12 = sshll.u32 %s2142_s29, 4 }
  0x7e   : > { %p319_p13 = scmp.lt.s32.totalorder %s1426_s12, 31  ;;  %s3410_s3 = sld [smem:[#allocation61_spill]] }
  0x7f   : > { %s309_s18 = scalar_lea.vmem [#allocation12], %s2463_s14  ;;  %s2473_s4 = scalar_lea.vmem [#allocation13], %s2463_s14 }
  0x80   : > { %s3544_s12 = smov (!%p319_p13, %s1426_s12), 31  ;;  %p1428_p6 = scmp.ne.s32.totalorder %s2138_s28, 0 }
  0x81   : > { %s1427_s8 = sshll.u32 %s3544_s12, 3  ;;  %s2476_s23 = sld [smem:[#allocation6]] (!%p1428_p6)  ;;  %vm378_vm0 = vcmask (!%p1428_p6), 7168   ;;  %v329_v0 = vld [vmem:[%s2449_s13] sm:$0xff] (!%p1428_p6)  ;;  %v2160_v1 = vmov (!%p1428_p6), -inf   ;;  %v2161_v2 = vmov (!%p1428_p6), 0.0  }
  0x82   : > { %327 = sbr.rel (%p1428_p6) target bundleno = 154 (0x9a), region = 44  ;;  %379 = vst.msk [vmem:[#allocation3] sm:$0xff] (!%p1428_p6), %vm378_vm0, %v2160_v1  ;;  %380 = vst.msk [vmem:[#allocation3 + $0x8] sm:$0xff] (!%p1428_p6), %vm378_vm0, %v2160_v1  ;;  %v330_v3 = vld [vmem:[%s2449_s13 + $0x8] sm:$0xff] (!%p1428_p6)  ;;  %v331_v4 = vld [vmem:[%s2449_s13 + $0x10] sm:$0xff] (!%p1428_p6) }
  0x83   : > { %381 = vst.msk [vmem:[#allocation3 + $0x10] sm:$0xff] (!%p1428_p6), %vm378_vm0, %v2160_v1  ;;  %382 = vst.msk [vmem:[#allocation3 + $0x18] sm:$0xff] (!%p1428_p6), %vm378_vm0, %v2160_v1  ;;  %v332_v5 = vld [vmem:[%s2449_s13 + $0x18] sm:$0xff] (!%p1428_p6)  ;;  %v333_v6 = vld [vmem:[%s2449_s13 + $0x20] sm:$0xff] (!%p1428_p6) }
  0x84   : > { %s2469_s11 = scalar_lea.vmem %s3410_s3, %s1427_s8  ;;  %383 = vst.msk [vmem:[#allocation3 + $0x20] sm:$0xff] (!%p1428_p6), %vm378_vm0, %v2160_v1  ;;  %384 = vst.msk [vmem:[#allocation3 + $0x28] sm:$0xff] (!%p1428_p6), %vm378_vm0, %v2160_v1  ;;  %v334_v7 = vld [vmem:[%s2449_s13 + $0x28] sm:$0xff] (!%p1428_p6)  ;;  %v335_v8 = vld [vmem:[%s2449_s13 + $0x30] sm:$0xff] (!%p1428_p6) }
  0x85   : > { %385 = vst.msk [vmem:[#allocation3 + $0x30] sm:$0xff] (!%p1428_p6), %vm378_vm0, %v2160_v1  ;;  %386 = vst.msk [vmem:[#allocation3 + $0x38] sm:$0xff] (!%p1428_p6), %vm378_vm0, %v2160_v1  ;;  %v336_v9 = vld [vmem:[%s2449_s13 + $0x38] sm:$0xff] (!%p1428_p6)  ;;  %v337_v10 = vld [vmem:[%s2449_s13 + $0x40] sm:$0xff] (!%p1428_p6) }
  0x86   : > { %387 = vst.msk [vmem:[#allocation3 + $0x40] sm:$0xff] (!%p1428_p6), %vm378_vm0, %v2160_v1  ;;  %388 = vst.msk [vmem:[#allocation3 + $0x48] sm:$0xff] (!%p1428_p6), %vm378_vm0, %v2160_v1  ;;  %v338_v11 = vld [vmem:[%s2449_s13 + $0x48] sm:$0xff] (!%p1428_p6)  ;;  %v339_v13 = vld [vmem:[%s2449_s13 + $0x50] sm:$0xff] (!%p1428_p6) }
  0x87   : > { %389 = vst.msk [vmem:[#allocation3 + $0x50] sm:$0xff] (!%p1428_p6), %vm378_vm0, %v2160_v1  ;;  %390 = vst.msk [vmem:[#allocation3 + $0x58] sm:$0xff] (!%p1428_p6), %vm378_vm0, %v2160_v1  ;;  %v345_v12 = vstv (!%p1428_p6), %s2476_s23  ;;  %v340_v14 = vld [vmem:[%s2449_s13 + $0x58] sm:$0xff] (!%p1428_p6)  ;;  %v341_v15 = vld [vmem:[%s2449_s13 + $0x60] sm:$0xff] (!%p1428_p6) }
  0x88   : > { %391 = vst.msk [vmem:[#allocation3 + $0x60] sm:$0xff] (!%p1428_p6), %vm378_vm0, %v2160_v1  ;;  %392 = vst.msk [vmem:[#allocation3 + $0x68] sm:$0xff] (!%p1428_p6), %vm378_vm0, %v2160_v1  ;;  %v346_v16 = vmul.f32 (!%p1428_p6), %v345_v12, %v329_v0  ;;  %v347_v17 = vmul.f32 (!%p1428_p6), %v345_v12, %v330_v3  ;;  %v348_v18 = vmul.f32 (!%p1428_p6), %v345_v12, %v331_v4  ;;  %v342_v20 = vld [vmem:[%s2449_s13 + $0x68] sm:$0xff] (!%p1428_p6)  ;;  %v343_v21 = vld [vmem:[%s2449_s13 + $0x70] sm:$0xff] (!%p1428_p6) }
  0x89   : > { %393 = vst.msk [vmem:[#allocation3 + $0x70] sm:$0xff] %vm378_vm0, %v2160_v1  ;;  %394 = vst.msk [vmem:[#allocation3 + $0x78] sm:$0xff] %vm378_vm0, %v2160_v1  ;;  %v349_v19 = vmul.f32 %v345_v12, %v332_v5  ;;  %v344_v22 = vld [vmem:[%s2449_s13 + $0x78] sm:$0xff]  ;;  %v350_v23 = vmul.f32 %v345_v12, %v333_v6  ;;  %v351_v24 = vmul.f32 %v345_v12, %v334_v7 }
  0x8a   : > { %395 = vst.msk [vmem:[#allocation4] sm:$0xff] %vm378_vm0, %v2161_v2  ;;  %396 = vst.msk [vmem:[#allocation4 + $0x8] sm:$0xff] %vm378_vm0, %v2161_v2  ;;  %v352_v25 = vmul.f32 %v345_v12, %v335_v8  ;;  %v353_v26 = vmul.f32 %v345_v12, %v336_v9  ;;  %v354_v27 = vmul.f32 %v345_v12, %v337_v10 }
  0x8b   : > { %397 = vst.msk [vmem:[#allocation4 + $0x10] sm:$0xff] %vm378_vm0, %v2161_v2  ;;  %398 = vst.msk [vmem:[#allocation4 + $0x18] sm:$0xff] %vm378_vm0, %v2161_v2  ;;  %v355_v28 = vmul.f32 %v345_v12, %v338_v11  ;;  %v356_v29 = vmul.f32 %v345_v12, %v339_v13  ;;  %v357_v30 = vmul.f32 %v345_v12, %v340_v14 }
  0x8c   : > { %399 = vst.msk [vmem:[#allocation4 + $0x20] sm:$0xff] %vm378_vm0, %v2161_v2  ;;  %400 = vst.msk [vmem:[#allocation4 + $0x28] sm:$0xff] %vm378_vm0, %v2161_v2  ;;  %v358_v31 = vmul.f32 %v345_v12, %v341_v15  ;;  %v359_v32 = vmul.f32 %v345_v12, %v342_v20  ;;  %v360_v33 = vmul.f32 %v345_v12, %v343_v21 }
  0x8d   : > { %401 = vst.msk [vmem:[#allocation4 + $0x30] sm:$0xff] %vm378_vm0, %v2161_v2  ;;  %402 = vst.msk [vmem:[#allocation4 + $0x38] sm:$0xff] %vm378_vm0, %v2161_v2  ;;  %v361_v34 = vmul.f32 %v345_v12, %v344_v22 }
  0x8e   : > { %403 = vst.msk [vmem:[#allocation4 + $0x40] sm:$0xff] %vm378_vm0, %v2161_v2  ;;  %404 = vst.msk [vmem:[#allocation4 + $0x48] sm:$0xff] %vm378_vm0, %v2161_v2 }
  0x8f   : > { %405 = vst.msk [vmem:[#allocation4 + $0x50] sm:$0xff] %vm378_vm0, %v2161_v2  ;;  %406 = vst.msk [vmem:[#allocation4 + $0x58] sm:$0xff] %vm378_vm0, %v2161_v2 }
  0x90   : > { %407 = vst.msk [vmem:[#allocation4 + $0x60] sm:$0xff] %vm378_vm0, %v2161_v2  ;;  %408 = vst.msk [vmem:[#allocation4 + $0x68] sm:$0xff] %vm378_vm0, %v2161_v2 }
  0x91   : > { %409 = vst.msk [vmem:[#allocation4 + $0x70] sm:$0xff] %vm378_vm0, %v2161_v2  ;;  %410 = vst.msk [vmem:[#allocation4 + $0x78] sm:$0xff] %vm378_vm0, %v2161_v2 }
  0x92   : > { %362 = vst [vmem:[#allocation2] sm:$0xff] %v346_v16  ;;  %363 = vst [vmem:[#allocation2 + $0x8] sm:$0xff] %v347_v17 }
  0x93   : > { %364 = vst [vmem:[#allocation2 + $0x10] sm:$0xff] %v348_v18  ;;  %365 = vst [vmem:[#allocation2 + $0x18] sm:$0xff] %v349_v19 }
  0x94   : > { %366 = vst [vmem:[#allocation2 + $0x20] sm:$0xff] %v350_v23  ;;  %367 = vst [vmem:[#allocation2 + $0x28] sm:$0xff] %v351_v24 }
  0x95   : > { %368 = vst [vmem:[#allocation2 + $0x30] sm:$0xff] %v352_v25  ;;  %369 = vst [vmem:[#allocation2 + $0x38] sm:$0xff] %v353_v26 }
  0x96   : > { %370 = vst [vmem:[#allocation2 + $0x40] sm:$0xff] %v354_v27  ;;  %371 = vst [vmem:[#allocation2 + $0x48] sm:$0xff] %v355_v28 }
  0x97   : > { %372 = vst [vmem:[#allocation2 + $0x50] sm:$0xff] %v356_v29  ;;  %373 = vst [vmem:[#allocation2 + $0x58] sm:$0xff] %v357_v30 }
  0x98   : > { %374 = vst [vmem:[#allocation2 + $0x60] sm:$0xff] %v358_v31  ;;  %375 = vst [vmem:[#allocation2 + $0x68] sm:$0xff] %v359_v32 }
  0x99   : > { %376 = vst [vmem:[#allocation2 + $0x70] sm:$0xff] %v360_v33  ;;  %377 = vst [vmem:[#allocation2 + $0x78] sm:$0xff] %v361_v34 }
  0x9a PF: > { %v427_v35 = vld [vmem:[%s2456_s1] sm:$0xff]  ;;  %v428_v36 = vld [vmem:[%s2456_s1 + $0x8] sm:$0xff]  ;;  %v429_v37 = vld [vmem:[%s2456_s1 + $0x10] sm:$0xff]  ;;  %vm913_vm1 = vcmask 7168   ;;  %p1429_p4 = scmp.ne.s32.totalorder %s2138_s28, 1 }
  0x9b   : > { %v1526_v38 = vpack.c.bf16 %v428_v36, %v427_v35  ;;  %v430_v39 = vld [vmem:[%s2456_s1 + $0x18] sm:$0xff]  ;;  %v431_v43 = vld [vmem:[%s2456_s1 + $0x20] sm:$0xff]  ;;  %v432_v44 = vld [vmem:[%s2456_s1 + $0x28] sm:$0xff] }
  0x9c   : > { %v1530_v40 = vpack.c.bf16 %v430_v39, %v429_v37  ;;  %v411_v41 = vld [vmem:[#allocation2] sm:$0xff]  ;;  %v1534_v45 = vpack.c.bf16 %v432_v44, %v431_v43  ;;  %v433_v46 = vld [vmem:[%s2456_s1 + $0x30] sm:$0xff]  ;;  %v436_v50 = vld [vmem:[%s2456_s1 + $0x48] sm:$0xff] }
  0x9d   : > { %1527 = vmatprep.subr.bf16.mxu0 %v1526_v38  ;;  %1558 = vmatprep.subr.bf16.mxu1 %v1526_v38  ;;  %v419_v42 = vld [vmem:[#allocation2 + $0x40] sm:$0xff]  ;;  %v437_v52 = vld [vmem:[%s2456_s1 + $0x50] sm:$0xff]  ;;  %v440_v56 = vld [vmem:[%s2456_s1 + $0x68] sm:$0xff] }
  0x9e   : > { %1529 = vmatpush3.bf16.xpose.msra.mxu0 %v1526_v38  ;;  %1566 = vmatpush3.bf16.xpose.msra.mxu1 %v1526_v38  ;;  %v434_v47 = vld [vmem:[%s2456_s1 + $0x38] sm:$0xff]  ;;  %v435_v49 = vld [vmem:[%s2456_s1 + $0x40] sm:$0xff]  ;;  %v441_v58 = vld [vmem:[%s2456_s1 + $0x70] sm:$0xff] }
  0x9f   : > { %1531 = vmatprep.subr.bf16.mxu0 %v1530_v40  ;;  %1559 = vmatprep.subr.bf16.mxu1 %v1530_v40  ;;  %v1538_v48 = vpack.c.bf16 %v434_v47, %v433_v46  ;;  %v1542_v51 = vpack.c.bf16 %v436_v50, %v435_v49  ;;  %v438_v53 = vld [vmem:[%s2456_s1 + $0x58] sm:$0xff]  ;;  %v439_v55 = vld [vmem:[%s2456_s1 + $0x60] sm:$0xff]  ;;  %v413_v63 = vld [vmem:[#allocation2 + $0x10] sm:$0xff] }
  0xa0   : > { %1502 = vmatprep.mubr.f32.mxu0 %v411_v41  ;;  %1514 = vmatprep.mubr.f32.mxu1 %v419_v42  ;;  %v1546_v54 = vpack.c.bf16 %v438_v53, %v437_v52  ;;  %v1550_v57 = vpack.c.bf16 %v440_v56, %v439_v55  ;;  %v442_v59 = vld [vmem:[%s2456_s1 + $0x78] sm:$0xff]  ;;  %v412_v61 = vld [vmem:[#allocation2 + $0x8] sm:$0xff]  ;;  %v421_v0 = vld [vmem:[#allocation2 + $0x50] sm:$0xff] }
  0xa1   : > { %v1554_v60 = vpack.c.bf16 %v442_v59, %v441_v58  ;;  %v420_v62 = vld [vmem:[#allocation2 + $0x48] sm:$0xff]  ;;  %v414_v1 = vld [vmem:[#allocation2 + $0x18] sm:$0xff]  ;;  %v415_v3 = vld [vmem:[#allocation2 + $0x20] sm:$0xff] }
  0xa2   : > { %v422_v2 = vld [vmem:[#allocation2 + $0x58] sm:$0xff]  ;;  %v423_v4 = vld [vmem:[#allocation2 + $0x60] sm:$0xff]  ;;  %v416_v5 = vld [vmem:[#allocation2 + $0x28] sm:$0xff] }
  0xa3   : > { %v424_v6 = vld [vmem:[#allocation2 + $0x68] sm:$0xff]  ;;  %v417_v7 = vld [vmem:[#allocation2 + $0x30] sm:$0xff]  ;;  %v418_v9 = vld [vmem:[#allocation2 + $0x38] sm:$0xff] }
  0xa4   : > { %v425_v8 = vld [vmem:[#allocation2 + $0x70] sm:$0xff]  ;;  %v426_v10 = vld [vmem:[#allocation2 + $0x78] sm:$0xff]  ;;  %v2611_v49 = vld [vmem:[#allocation3 + $0x8] sm:$0xff] }
  0xa5   : > { %v2637_v59 = vld [vmem:[#allocation3] sm:$0xff] }
  0xa6   : > { %1533 = vmatpush3.bf16.xpose.msra.mxu0 %v1530_v40  ;;  %1567 = vmatpush3.bf16.xpose.msra.mxu1 %v1530_v40 }
  0xa7   : > { %1535 = vmatprep.subr.bf16.mxu0 %v1534_v45  ;;  %1560 = vmatprep.subr.bf16.mxu1 %v1534_v45 }
  0xae   : > { %1537 = vmatpush3.bf16.xpose.msra.mxu0 %v1534_v45  ;;  %1568 = vmatpush3.bf16.xpose.msra.mxu1 %v1534_v45 }
  0xaf   : > { %1539 = vmatprep.subr.bf16.mxu0 %v1538_v48  ;;  %1561 = vmatprep.subr.bf16.mxu1 %v1538_v48 }
  0xb6   : > { %1541 = vmatpush3.bf16.xpose.msra.mxu0 %v1538_v48  ;;  %1569 = vmatpush3.bf16.xpose.msra.mxu1 %v1538_v48  ;;  %v2609_v48 = vld [vmem:[#allocation3 + $0x48] sm:$0xff] }
  0xb7   : > { %1543 = vmatprep.subr.bf16.mxu0 %v1542_v51  ;;  %1562 = vmatprep.subr.bf16.mxu1 %v1542_v51 }
  0xbe   : > { %1545 = vmatpush3.bf16.xpose.msra.mxu0 %v1542_v51  ;;  %1570 = vmatpush3.bf16.xpose.msra.mxu1 %v1542_v51 }
  0xbf   : > { %1547 = vmatprep.subr.bf16.mxu0 %v1546_v54  ;;  %1563 = vmatprep.subr.bf16.mxu1 %v1546_v54 }
  0xc6   : > { %1549 = vmatpush3.bf16.xpose.msra.mxu0 %v1546_v54  ;;  %1571 = vmatpush3.bf16.xpose.msra.mxu1 %v1546_v54 }
  0xc7   : > { %1551 = vmatprep.subr.bf16.mxu0 %v1550_v57  ;;  %1564 = vmatprep.subr.bf16.mxu1 %v1550_v57 }
  0xce   : > { %1553 = vmatpush3.bf16.xpose.msra.mxu0 %v1550_v57  ;;  %1572 = vmatpush3.bf16.xpose.msra.mxu1 %v1550_v57 }
  0xcf   : > { %1555 = vmatprep.subr.bf16.mxu0 %v1554_v60  ;;  %1565 = vmatprep.subr.bf16.mxu1 %v1554_v60 }
  0xd6   : > { %1557 = vmatpush3.bf16.xpose.msra.mxu0 %v1554_v60  ;;  %1573 = vmatpush3.bf16.xpose.msra.mxu1 %v1554_v60 }
  0xdd   : > { %1503 = vmatmul.mubr.f32.vlgmr.msra.gmra.mrb[0].mxu0 %v412_v61  ;;  %1515 = vmatmul.mubr.f32.vlgmr.msra.gmra.mrb[0].mxu1 %v420_v62 }
  0xde   : > { %1505 = vmatprep.mubr.f32.mxu0 %v413_v63  ;;  %1517 = vmatprep.mubr.f32.mxu1 %v421_v0  ;;  %v2645_v63 = vld [vmem:[#allocation3 + $0x18] sm:$0xff] }
  0xe1   : > { %1506 = vmatmul.mubr.f32.gmra.mrb[2].mxu0 %v414_v1  ;;  %1518 = vmatmul.mubr.f32.gmra.mrb[2].mxu1 %v422_v2 }
  0xe2   : > { %1508 = vmatprep.mubr.f32.mxu0 %v415_v3  ;;  %1520 = vmatprep.mubr.f32.mxu1 %v423_v4 }
  0xe5   : > { %1509 = vmatmul.mubr.f32.gmra.mrb[4].mxu0 %v416_v5  ;;  %1521 = vmatmul.mubr.f32.gmra.mrb[4].mxu1 %v424_v6 }
  0xe6   : > { %1511 = vmatprep.mubr.f32.mxu0 %v417_v7  ;;  %1523 = vmatprep.mubr.f32.mxu1 %v425_v8 }
  0xe9   : > { %1512 = vmatmul.mubr.f32.gmra.mrb[6].mxu0 %v418_v9  ;;  %1524 = vmatmul.mubr.f32.gmra.mrb[6].mxu1 %v426_v10  ;;  %v2667_v9 = vld [vmem:[#allocation3 + $0x40] sm:$0xff] }
 0x1b0   : > { %v2543_v11 = vpop.f32.mrb[0].mxu0  ;;  %v2545_v12 = vpop.f32.mrb[0].mxu1 }
 0x1b1   : > { %3411 = vst [vmem:[#allocation23_spill] sm:$0xff] %v2543_v11  ;;  %3412 = vst [vmem:[#allocation24_spill] sm:$0xff] %v2545_v12  ;;  %606 = vmax.xlane.f32.xlu1 %v2545_v12  ;;  %v2548_v13 = vpop.f32.mrb[1].mxu1  ;;  %590 = vmax.xlane.f32.xlu0 %v2543_v11  ;;  %v2551_v14 = vpop.f32.mrb[1].mxu0 }
 0x1b2   : > { %3413 = vst [vmem:[#allocation25_spill] sm:$0xff] %v2548_v13  ;;  %3414 = vst [vmem:[#allocation26_spill] sm:$0xff] %v2551_v14 }
 0x1b4   : > { %v2553_v15 = vpop.f32.mrb[2].mxu0  ;;  %v2555_v16 = vpop.f32.mrb[2].mxu1 }
 0x1b5   : > { %3415 = vst [vmem:[#allocation27_spill] sm:$0xff] %v2553_v15  ;;  %3416 = vst [vmem:[#allocation28_spill] sm:$0xff] %v2555_v16  ;;  %588 = vmax.xlane.f32.xlu0 %v2551_v14  ;;  %594 = vmax.xlane.f32.xlu1 %v2553_v15  ;;  %v2559_v17 = vpop.f32.mrb[3].mxu0  ;;  %v2561_v18 = vpop.f32.mrb[3].mxu1 }
 0x1b6   : > { %3417 = vst [vmem:[#allocation29_spill] sm:$0xff] %v2559_v17  ;;  %3418 = vst [vmem:[#allocation30_spill] sm:$0xff] %v2561_v18 }
 0x1b8   : > { %v2563_v19 = vpop.f32.mrb[4].mxu0  ;;  %v2565_v20 = vpop.f32.mrb[4].mxu1 }
 0x1b9   : > { %3419 = vst [vmem:[#allocation31_spill] sm:$0xff] %v2563_v19  ;;  %3420 = vst [vmem:[#allocation32_spill] sm:$0xff] %v2565_v20  ;;  %v621_v21 = vmax.f32 %v2543_v11, %v2563_v19  ;;  %604 = vmax.xlane.f32.xlu0 %v2548_v13  ;;  %610 = vmax.xlane.f32.xlu1 %v2555_v16  ;;  %v2571_v22 = vpop.f32.mrb[5].mxu0  ;;  %v2573_v23 = vpop.f32.mrb[5].mxu1 }
 0x1ba   : > { %3421 = vst [vmem:[#allocation33_spill] sm:$0xff] %v2571_v22  ;;  %3422 = vst [vmem:[#allocation34_spill] sm:$0xff] %v2573_v23  ;;  %v620_v24 = vmax.f32 %v2551_v14, %v2571_v22 }
 0x1bb   : > { %v625_v25 = vmax.f32 %v621_v21, %v2545_v12 }
 0x1bc   : > { %v2578_v26 = vpop.f32.mrb[6].mxu0  ;;  %v624_v27 = vmax.f32 %v620_v24, %v2548_v13  ;;  %v2581_v28 = vpop.f32.mrb[6].mxu1 }
 0x1bd   : > { %3423 = vst [vmem:[#allocation35_spill] sm:$0xff] %v2578_v26  ;;  %3424 = vst [vmem:[#allocation36_spill] sm:$0xff] %v2581_v28  ;;  %v623_v29 = vmax.f32 %v2553_v15, %v2578_v26  ;;  %v629_v30 = vmax.f32 %v625_v25, %v2565_v20  ;;  %608 = vmax.xlane.f32.xlu0 %v2561_v18  ;;  %592 = vmax.xlane.f32.xlu1 %v2559_v17  ;;  %v2588_v31 = vpop.f32.mrb[7].mxu0  ;;  %v2590_v32 = vpop.f32.mrb[7].mxu1 }
 0x1be   : > { %3425 = vst [vmem:[#allocation37_spill] sm:$0xff] %v2588_v31  ;;  %3426 = vst [vmem:[#allocation38_spill] sm:$0xff] %v2590_v32  ;;  %v628_v33 = vmax.f32 %v624_v27, %v2573_v23  ;;  %v622_v34 = vmax.f32 %v2559_v17, %v2588_v31  ;;  %v2679_v27 = vld [vmem:[#allocation3 + $0x58] sm:$0xff] }
 0x1bf   : > { %v627_v35 = vmax.f32 %v623_v29, %v2555_v16 }
 0x1c0   : > { %v632_v36 = vmax.f32 %v628_v33, %v629_v30  ;;  %v626_v37 = vmax.f32 %v622_v34, %v2561_v18 }
 0x1c1   : > { %v631_v38 = vmax.f32 %v627_v35, %v2581_v28  ;;  %598 = vmax.xlane.f32.xlu1 %v2563_v19  ;;  %596 = vmax.xlane.f32.xlu0 %v2571_v22 }
 0x1c2   : > { %v630_v39 = vmax.f32 %v626_v37, %v2590_v32 }
 0x1c4   : > { %v633_v40 = vmax.f32 %v630_v39, %v631_v38 }
 0x1c5   : > { %614 = vmax.xlane.f32.xlu1 %v2565_v20  ;;  %612 = vmax.xlane.f32.xlu0 %v2573_v23 }
 0x1c6   : > { %v634_v41 = vmax.f32 %v632_v36, %v633_v40 }
 0x1c8   : > { %v635_v42 = vrot.slane %v634_v41, 4 }
 0x1c9   : > { %602 = vmax.xlane.f32.xlu1 %v2578_v26  ;;  %600 = vmax.xlane.f32.xlu0 %v2588_v31 }
 0x1ca   : > { %v636_v43 = vmax.f32 %v634_v41, %v635_v42  ;;  %v2703_v41 = vld [vmem:[#allocation3 + $0x50] sm:$0xff] }
 0x1cc   : > { %v637_v44 = vrot.slane %v636_v43, 2 }
 0x1cd   : > { %618 = vmax.xlane.f32.xlu1 %v2581_v28  ;;  %616 = vmax.xlane.f32.xlu0 %v2590_v32 }
 0x1ce   : > { %v638_v45 = vmax.f32 %v636_v43, %v637_v44  ;;  %v2711_v44 = vld [vmem:[#allocation3 + $0x10] sm:$0xff]  ;;  %v2754_v43 = vld [vmem:[#allocation3 + $0x68] sm:$0xff] }
 0x1d0   : > { %v639_v46 = vrot.slane %v638_v45, 1 }
 0x1d2   : > { %v2607_v47 = vmax.f32 %v638_v45, %v639_v46  ;;  %v2713_v45 = vld [vmem:[#allocation3 + $0x28] sm:$0xff] }
 0x23e   : > { %v2613_v50 = vpop.xlane.xlu1 %606  ;;  %v2615_v51 = vpop.xlane.xlu0 %590 }
 0x23f   : > { %v2619_v52 = vmax.f32 %v2609_v48, %v2613_v50  ;;  %v642_v53 = vsub.f32 %v2543_v11, %v2615_v51  ;;  %v2625_v54 = vmax.f32 %v2611_v49, %v2615_v51  ;;  %v650_v55 = vsub.f32 %v2545_v12, %v2613_v50  ;;  %v2853_v11 = vld [vmem:[#allocation3 + $0x70] sm:$0xff] }
 0x241   : > { %923 = vst.msk [vmem:[#allocation3 + $0x48] sm:$0xff] %vm913_vm1, %v2619_v52  ;;  %v659_v58 = vmul.f32 1.442695, %v642_v53  ;;  %915 = vst.msk [vmem:[#allocation3 + $0x8] sm:$0xff] %vm913_vm1, %v2625_v54  ;;  %v675_v2 = vmul.f32 1.442695, %v650_v55 }
 0x242   : > { %v2643_v62 = vpop.xlane.xlu0 %588  ;;  %v2647_v0 = vpop.xlane.xlu1 %594 }
 0x243   : > { %v641_v1 = vsub.f32 %v2551_v14, %v2643_v62  ;;  %1718 = vpow2.f32 %v659_v58  ;;  %v2653_v3 = vmax.f32 %v2637_v59, %v2643_v62  ;;  %v644_v5 = vsub.f32 %v2553_v15, %v2647_v0 }
 0x244   : > { %v2659_v6 = vmax.f32 %v2645_v63, %v2647_v0  ;;  %1720 = vpow2.f32 %v675_v2 }
 0x245   : > { %v657_v4 = vmul.f32 1.442695, %v641_v1  ;;  %914 = vst.msk [vmem:[#allocation3] sm:$0xff] %vm913_vm1, %v2653_v3  ;;  %v663_v29 = vmul.f32 1.442695, %v644_v5  ;;  %v2748_v5 = vld [vmem:[#allocation3 + $0x20] sm:$0xff] }
 0x246   : > { %v2669_v10 = vpop.xlane.xlu0 %604  ;;  %v2671_v21 = vpop.xlane.xlu1 %610  ;;  %917 = vst.msk [vmem:[#allocation3 + $0x18] sm:$0xff] %vm913_vm1, %v2659_v6 }
 0x247   : > { %3427 = vst [vmem:[#allocation39_spill] sm:$0xff] %v2671_v21  ;;  %v649_v30 = vsub.f32 %v2548_v13, %v2669_v10  ;;  %1722 = vpow2.f32 %v657_v4  ;;  %v2685_v33 = vmax.f32 %v2667_v9, %v2669_v10  ;;  %v652_v34 = vsub.f32 %v2555_v16, %v2671_v21  ;;  %v2811_v13 = vld [vmem:[#allocation3 + $0x30] sm:$0xff] }
 0x248   : > { %v2691_v35 = vmax.f32 %v2679_v27, %v2671_v21  ;;  %1724 = vpow2.f32 %v663_v29 }
 0x249   : > { %v673_v38 = vmul.f32 1.442695, %v649_v30  ;;  %922 = vst.msk [vmem:[#allocation3 + $0x40] sm:$0xff] %vm913_vm1, %v2685_v33  ;;  %v679_v53 = vmul.f32 1.442695, %v652_v34 }
 0x24a   : > { %v2693_v36 = vpop.xlane.xlu0 %608  ;;  %v2695_v37 = vpop.xlane.xlu1 %592  ;;  %925 = vst.msk [vmem:[#allocation3 + $0x58] sm:$0xff] %vm913_vm1, %v2691_v35 }
 0x24b   : > { %v2719_v55 = vmax.f32 %v2703_v41, %v2693_v36  ;;  %1726 = vpow2.f32 %v673_v38  ;;  %v2727_v2 = vmax.f32 %v2711_v44, %v2695_v37  ;;  %v643_v29 = vsub.f32 %v2559_v17, %v2695_v37  ;;  %v2839_v17 = vld [vmem:[#allocation3 + $0x78] sm:$0xff] }
 0x24c   : > { %1728 = vpow2.f32 %v679_v53  ;;  %v651_v53 = vsub.f32 %v2561_v18, %v2693_v36  ;;  %v2801_v18 = vld [vmem:[#allocation3 + $0x38] sm:$0xff] }
 0x24d   : > { %v2715_v46 = vpop.eup %1718  ;;  %924 = vst.msk [vmem:[#allocation3 + $0x50] sm:$0xff] %vm913_vm1, %v2719_v55  ;;  %916 = vst.msk [vmem:[#allocation3 + $0x10] sm:$0xff] %vm913_vm1, %v2727_v2  ;;  %v661_v25 = vmul.f32 1.442695, %v643_v29  ;;  %v2786_v29 = vld [vmem:[#allocation3 + $0x60] sm:$0xff] }
 0x24e   : > { %3428 = vst [vmem:[#allocation40_spill] sm:$0xff] %v2715_v46  ;;  %v2721_v58 = vpop.xlane.xlu1 %598  ;;  %v2723_v1 = vpop.xlane.xlu0 %596  ;;  %803 = vadd.xlane.f32.xlu1 %v2715_v46  ;;  %v677_v7 = vmul.f32 1.442695, %v651_v53 }
 0x24f   : > { %v2740_v30 = vmax.f32 %v2713_v45, %v2721_v58  ;;  %v2750_v4 = vpop.eup %1720  ;;  %v646_v38 = vsub.f32 %v2563_v19, %v2721_v58  ;;  %v2773_v8 = vmax.f32 %v2748_v5, %v2723_v1  ;;  %1730 = vpow2.f32 %v661_v25 }
 0x250   : > { %3429 = vst [vmem:[#allocation41_spill] sm:$0xff] %v2750_v4  ;;  %v645_v16 = vsub.f32 %v2571_v22, %v2723_v1 }
 0x251   : > { %919 = vst.msk [vmem:[#allocation3 + $0x28] sm:$0xff] %vm913_vm1, %v2740_v30  ;;  %v2758_v40 = vpop.eup %1722  ;;  %918 = vst.msk [vmem:[#allocation3 + $0x20] sm:$0xff] %vm913_vm1, %v2773_v8  ;;  %v667_v24 = vmul.f32 1.442695, %v646_v38 }
 0x252   : > { %v2756_v42 = vpop.xlane.xlu1 %614  ;;  %3431 = vst [vmem:[#allocation43_spill] sm:$0xff] %v2758_v40  ;;  %v2764_v39 = vpop.xlane.xlu0 %612  ;;  %819 = vadd.xlane.f32.xlu1 %v2750_v4  ;;  %801 = vadd.xlane.f32.xlu0 %v2758_v40  ;;  %v665_v22 = vmul.f32 1.442695, %v645_v16 }
 0x253   : > { %3430 = vst [vmem:[#allocation42_spill] sm:$0xff] %v2756_v42  ;;  %v2778_v34 = vmax.f32 %v2754_v43, %v2756_v42  ;;  %v2780_v57 = vpop.eup %1724  ;;  %v654_v61 = vsub.f32 %v2565_v20, %v2756_v42  ;;  %v2809_v12 = vmax.f32 %v2786_v29, %v2764_v39  ;;  %1732 = vpow2.f32 %v667_v24 }
 0x254   : > { %3432 = vst [vmem:[#allocation44_spill] sm:$0xff] %v2780_v57  ;;  %1734 = vpow2.f32 %v677_v7  ;;  %v653_v24 = vsub.f32 %v2573_v23, %v2764_v39 }
 0x255   : > { %927 = vst.msk [vmem:[#allocation3 + $0x68] sm:$0xff] %vm913_vm1, %v2778_v34  ;;  %v2803_v56 = vpop.eup %1726  ;;  %926 = vst.msk [vmem:[#allocation3 + $0x60] sm:$0xff] %vm913_vm1, %v2809_v12  ;;  %v683_v15 = vmul.f32 1.442695, %v654_v61  ;;  %1736 = vpow2.f32 %v665_v22 }
 0x256   : > { %807 = vadd.xlane.f32.xlu1 %v2780_v57  ;;  %v2795_v60 = vpop.xlane.xlu1 %602  ;;  %3433 = vst [vmem:[#allocation45_spill] sm:$0xff] %v2803_v56  ;;  %v2813_v25 = vpop.xlane.xlu0 %600  ;;  %817 = vadd.xlane.f32.xlu0 %v2803_v56 }
 0x257   : > { %v2824_v20 = vmax.f32 %v2801_v18, %v2795_v60  ;;  %v2826_v19 = vpop.eup %1728  ;;  %v2832_v53 = vmax.f32 %v2811_v13, %v2813_v25  ;;  %v648_v61 = vsub.f32 %v2578_v26, %v2795_v60  ;;  %1738 = vpow2.f32 %v683_v15 }
 0x258   : > { %3434 = vst [vmem:[#allocation46_spill] sm:$0xff] %v2826_v19  ;;  %v647_v4 = vsub.f32 %v2588_v31, %v2813_v25 }
 0x259   : > { %921 = vst.msk [vmem:[#allocation3 + $0x38] sm:$0xff] %vm913_vm1, %v2824_v20  ;;  %920 = vst.msk [vmem:[#allocation3 + $0x30] sm:$0xff] %vm913_vm1, %v2832_v53  ;;  %v2861_v23 = vpop.eup %1730 }
 0x25a   : > { %823 = vadd.xlane.f32.xlu1 %v2826_v19  ;;  %v2841_v7 = vpop.xlane.xlu1 %618  ;;  %v2855_v14 = vpop.xlane.xlu0 %616  ;;  %v681_v19 = vmul.f32 1.442695, %v653_v24  ;;  %3437 = vst [vmem:[#allocation49_spill] sm:$0xff] %v2861_v23  ;;  %v671_v24 = vmul.f32 1.442695, %v648_v61  ;;  %805 = vadd.xlane.f32.xlu0 %v2861_v23 }
 0x25b   : > { %3435 = vst [vmem:[#allocation47_spill] sm:$0xff] %v2841_v7  ;;  %3436 = vst [vmem:[#allocation48_spill] sm:$0xff] %v2855_v14  ;;  %v2859_v16 = vmax.f32 %v2839_v17, %v2841_v7  ;;  %v2871_v22 = vmax.f32 %v2853_v11, %v2855_v14  ;;  %v656_v26 = vsub.f32 %v2581_v28, %v2841_v7  ;;  %v669_v56 = vmul.f32 1.442695, %v647_v4 }
 0x25c   : > { %1740 = vpow2.f32 %v681_v19  ;;  %v655_v19 = vsub.f32 %v2590_v32, %v2855_v14  ;;  %v3448_v32 = vsub.f32 %v2615_v51, %v2625_v54 }
 0x25d   : > { %929 = vst.msk [vmem:[#allocation3 + $0x78] sm:$0xff] %vm913_vm1, %v2859_v16  ;;  %928 = vst.msk [vmem:[#allocation3 + $0x70] sm:$0xff] %vm913_vm1, %v2871_v22  ;;  %v2878_v38 = vpop.eup %1732  ;;  %1742 = vpow2.f32 %v671_v24  ;;  %v687_v61 = vmul.f32 1.442695, %v656_v26 }
 0x25e   : > { %3438 = vst [vmem:[#allocation50_spill] sm:$0xff] %v2878_v38  ;;  %v2882_v31 = vpop.eup %1734  ;;  %811 = vadd.xlane.f32.xlu1 %v2878_v38  ;;  %1744 = vpow2.f32 %v669_v56  ;;  %v685_v28 = vmul.f32 1.442695, %v655_v19 }
 0x25f   : > { %3439 = vst [vmem:[#allocation51_spill] sm:$0xff] %v2882_v31  ;;  %821 = vadd.xlane.f32.xlu0 %v2882_v31  ;;  %v2888_v15 = vpop.eup %1736  ;;  %1746 = vpow2.f32 %v687_v61  ;;  %v3447_v61 = vsub.f32 %v2611_v49, %v2625_v54  ;;  %v3452_v49 = vsub.f32 %v2643_v62, %v2653_v3 }
 0x260   : > { %3440 = vst [vmem:[#allocation52_spill] sm:$0xff] %v2888_v15  ;;  %1748 = vpow2.f32 %v685_v28 }
 0x261   : > { %v2890_v57 = vpop.eup %1738  ;;  %v755_v28 = vmul.f32 1.442695, %v3447_v61  ;;  %v849_v61 = vmul.f32 1.442695, %v3452_v49 }
 0x262   : > { %3441 = vst [vmem:[#allocation53_spill] sm:$0xff] %v2890_v57  ;;  %827 = vadd.xlane.f32.xlu1 %v2890_v57  ;;  %v851_v57 = vmul.f32 1.442695, %v3448_v32  ;;  %v3453_v32 = vsub.f32 %v2645_v63, %v2659_v6  ;;  %v3457_v63 = vsub.f32 %v2679_v27, %v2691_v35 }
 0x263   : > { %809 = vadd.xlane.f32.xlu0 %v2888_v15  ;;  %1750 = vpow2.f32 %v755_v28  ;;  %v721_v15 = vld [vmem:[#allocation4] sm:$0xff] }
 0x264   : > { %1752 = vpow2.f32 %v851_v57 }
 0x266   : > { %v2894_v4 = vpop.eup %1740 }
 0x267   : > { %3442 = vst [vmem:[#allocation54_spill] sm:$0xff] %v2894_v4  ;;  %825 = vadd.xlane.f32.xlu0 %v2894_v4  ;;  %v2897_v24 = vpop.eup %1742  ;;  %v3449_v4 = vsub.f32 %v2609_v48, %v2619_v52  ;;  %v759_v48 = vmul.f32 1.442695, %v3453_v32 }
 0x268   : > { %3443 = vst [vmem:[#allocation55_spill] sm:$0xff] %v2897_v24  ;;  %815 = vadd.xlane.f32.xlu1 %v2897_v24  ;;  %v2900_v26 = vpop.eup %1744 }
 0x269   : > { %3444 = vst [vmem:[#allocation56_spill] sm:$0xff] %v2900_v26  ;;  %v2903_v56 = vpop.eup %1746  ;;  %v771_v31 = vmul.f32 1.442695, %v3449_v4 }
 0x26a   : > { %3445 = vst [vmem:[#allocation57_spill] sm:$0xff] %v2903_v56  ;;  %v2906_v19 = vpop.eup %1748 }
 0x26b   : > { %813 = vadd.xlane.f32.xlu0 %v2900_v26  ;;  %3446 = vst [vmem:[#allocation58_spill] sm:$0xff] %v2906_v19  ;;  %1754 = vpow2.f32 %v771_v31 }
 0x26c   : > { %831 = vadd.xlane.f32.xlu1 %v2903_v56  ;;  %v3450_v56 = vsub.f32 %v2637_v59, %v2653_v3  ;;  %v3454_v59 = vsub.f32 %v2647_v0, %v2659_v6 }
 0x26d   : > { %v1751_v28 = vpop.eup %1750 }
 0x26e   : > { %v753_v24 = vmul.f32 1.442695, %v3450_v56  ;;  %v855_v4 = vmul.f32 1.442695, %v3454_v59  ;;  %v3455_v56 = vsub.f32 %v2667_v9, %v2685_v33  ;;  %v1753_v49 = vpop.eup %1752 }
 0x26f   : > { %829 = vadd.xlane.f32.xlu0 %v2906_v19  ;;  %v3451_v19 = vsub.f32 %v2613_v50, %v2619_v52 }
 0x270   : > { %1756 = vpow2.f32 %v753_v24  ;;  %v769_v57 = vmul.f32 1.442695, %v3455_v56  ;;  %v775_v24 = vmul.f32 1.442695, %v3457_v63 }
 0x271   : > { %v867_v26 = vmul.f32 1.442695, %v3451_v19  ;;  %v3456_v19 = vsub.f32 %v2669_v10, %v2685_v33 }
 0x273   : > { %1758 = vpow2.f32 %v867_v26  ;;  %v865_v31 = vmul.f32 1.442695, %v3456_v19  ;;  %v722_v26 = vld [vmem:[#allocation4 + $0x8] sm:$0xff] }
 0x274   : > { %1760 = vpow2.f32 %v849_v61  ;;  %v3458_v61 = vsub.f32 %v2671_v21, %v2691_v35  ;;  %v730_v19 = vld [vmem:[#allocation4 + $0x48] sm:$0xff] }
 0x275   : > { %1762 = vpow2.f32 %v759_v48  ;;  %v786_v48 = vmul.f32 %v1751_v28, %v722_v26  ;;  %v1755_v56 = vpop.eup %1754 }
 0x276   : > { %1764 = vpow2.f32 %v855_v4  ;;  %v871_v32 = vmul.f32 1.442695, %v3458_v61 }
 0x277   : > { %1766 = vpow2.f32 %v769_v57  ;;  %v3459_v57 = vsub.f32 %v2711_v44, %v2727_v2  ;;  %v3461_v44 = vsub.f32 %v2713_v45, %v2740_v30 }
 0x278   : > { %1768 = vpow2.f32 %v865_v31  ;;  %v794_v31 = vmul.f32 %v1755_v56, %v730_v19  ;;  %v3462_v56 = vsub.f32 %v2703_v41, %v2719_v55 }
 0x279   : > { %1770 = vpow2.f32 %v775_v24  ;;  %v757_v63 = vmul.f32 1.442695, %v3459_v57 }
 0x27a   : > { %v1757_v38 = vpop.eup %1756  ;;  %1772 = vpow2.f32 %v871_v32  ;;  %v724_v32 = vld [vmem:[#allocation4 + $0x18] sm:$0xff] }
 0x27b   : > { %1774 = vpow2.f32 %v757_v63 }
 0x27d   : > { %v1759_v27 = vpop.eup %1758 }
 0x27e   : > { %v1761_v46 = vpop.eup %1760 }
 0x27f   : > { %v1763_v24 = vpop.eup %1762 }
 0x280   : > { %v1765_v40 = vpop.eup %1764  ;;  %v788_v45 = vmul.f32 %v1763_v24, %v724_v32  ;;  %v3465_v24 = vsub.f32 %v2748_v5, %v2773_v8 }
 0x281   : > { %v1767_v21 = vpop.eup %1766 }
 0x282   : > { %v1769_v63 = vpop.eup %1768 }
 0x2db   : > { %v804_v9 = vpop.xlane.xlu1 %803 }
 0x2dc   : > { %v882_v59 = vmul.f32 %v1753_v49, %v804_v9  ;;  %v3460_v49 = vsub.f32 %v2695_v37, %v2727_v2  ;;  %v785_v9 = vmul.f32 %v1757_v38, %v721_v15 }
 0x2de   : > { %v2945_v4 = vadd.f32 %v882_v59, %v786_v48  ;;  %v853_v61 = vmul.f32 1.442695, %v3460_v49  ;;  %v763_v59 = vmul.f32 1.442695, %v3461_v44  ;;  %v732_v44 = vld [vmem:[#allocation4 + $0x58] sm:$0xff] }
 0x2df   : > { %v820_v23 = vpop.xlane.xlu1 %819  ;;  %v802_v26 = vpop.xlane.xlu0 %801 }
 0x2e0   : > { %931 = vst.msk [vmem:[#allocation4 + $0x8] sm:$0xff] %vm913_vm1, %v2945_v4  ;;  %v890_v28 = vmul.f32 %v1759_v27, %v820_v23  ;;  %v881_v48 = vmul.f32 %v1761_v46, %v802_v26  ;;  %v773_v23 = vmul.f32 1.442695, %v3462_v56  ;;  %v3463_v46 = vsub.f32 %v2721_v58, %v2740_v30 }
 0x2e1   : > { %1776 = vpow2.f32 %v853_v61  ;;  %v3466_v61 = vsub.f32 %v2754_v43, %v2778_v34  ;;  %v3469_v43 = vsub.f32 %v2786_v29, %v2809_v12 }
 0x2e2   : > { %v2958_v57 = vadd.f32 %v890_v28, %v794_v31  ;;  %v2963_v19 = vadd.f32 %v881_v48, %v785_v9  ;;  %v859_v38 = vmul.f32 1.442695, %v3463_v46  ;;  %v729_v31 = vld [vmem:[#allocation4 + $0x40] sm:$0xff]  ;;  %v3464_v28 = vsub.f32 %v2693_v36, %v2719_v55  ;;  %v1771_v9 = vpop.eup %1770 }
 0x2e3   : > { %v808_v27 = vpop.xlane.xlu1 %807  ;;  %1778 = vpow2.f32 %v763_v59  ;;  %v818_v49 = vpop.xlane.xlu0 %817  ;;  %v793_v48 = vmul.f32 %v1767_v21, %v729_v31  ;;  %v779_v56 = vmul.f32 1.442695, %v3466_v61  ;;  %v3468_v21 = vsub.f32 %v2756_v42, %v2778_v34 }
 0x2e4   : > { %939 = vst.msk [vmem:[#allocation4 + $0x48] sm:$0xff] %vm913_vm1, %v2958_v57  ;;  %v884_v15 = vmul.f32 %v1765_v40, %v808_v27  ;;  %v869_v41 = vmul.f32 1.442695, %v3464_v28  ;;  %930 = vst.msk [vmem:[#allocation4] sm:$0xff] %vm913_vm1, %v2963_v19  ;;  %1780 = vpow2.f32 %v773_v23  ;;  %v761_v40 = vmul.f32 1.442695, %v3465_v24  ;;  %v1773_v59 = vpop.eup %1772 }
 0x2e5   : > { %v889_v32 = vmul.f32 %v1769_v63, %v818_v49  ;;  %1782 = vpow2.f32 %v859_v38  ;;  %v3467_v23 = vsub.f32 %v2723_v1, %v2773_v8  ;;  %v875_v38 = vmul.f32 1.442695, %v3468_v21  ;;  %v723_v24 = vld [vmem:[#allocation4 + $0x10] sm:$0xff] }
 0x2e6   : > { %v2975_v26 = vadd.f32 %v884_v15, %v788_v45  ;;  %1784 = vpow2.f32 %v869_v41  ;;  %v796_v45 = vmul.f32 %v1771_v9, %v732_v44  ;;  %v777_v31 = vmul.f32 1.442695, %v3469_v43  ;;  %v1775_v41 = vpop.eup %1774  ;;  %v731_v21 = vld [vmem:[#allocation4 + $0x50] sm:$0xff] }
 0x2e7   : > { %v857_v27 = vmul.f32 1.442695, %v3467_v23  ;;  %v2988_v46 = vadd.f32 %v889_v32, %v793_v48  ;;  %v824_v5 = vpop.xlane.xlu1 %823  ;;  %1786 = vpow2.f32 %v761_v40  ;;  %v3470_v63 = vsub.f32 %v2764_v39, %v2809_v12  ;;  %v806_v48 = vpop.xlane.xlu0 %805  ;;  %v726_v23 = vld [vmem:[#allocation4 + $0x28] sm:$0xff] }
 0x2e8   : > { %933 = vst.msk [vmem:[#allocation4 + $0x18] sm:$0xff] %vm913_vm1, %v2975_v26  ;;  %v892_v15 = vmul.f32 %v1773_v59, %v824_v5  ;;  %1788 = vpow2.f32 %v779_v56  ;;  %v3471_v9 = vsub.f32 %v2801_v18, %v2824_v20  ;;  %v3472_v44 = vsub.f32 %v2795_v60, %v2824_v20 }
 0x2e9   : > { %938 = vst.msk [vmem:[#allocation4 + $0x40] sm:$0xff] %vm913_vm1, %v2988_v46  ;;  %1790 = vpow2.f32 %v857_v27  ;;  %v873_v49 = vmul.f32 1.442695, %v3470_v63  ;;  %v787_v56 = vmul.f32 %v1775_v41, %v723_v24  ;;  %v3473_v18 = vsub.f32 %v2811_v13, %v2832_v53 }
 0x2ea   : > { %v2998_v28 = vadd.f32 %v892_v15, %v796_v45  ;;  %1792 = vpow2.f32 %v875_v38  ;;  %v767_v40 = vmul.f32 1.442695, %v3471_v9  ;;  %v863_v61 = vmul.f32 1.442695, %v3472_v44 }
 0x2eb   : > { %v1777_v29 = vpop.eup %1776  ;;  %1794 = vpow2.f32 %v777_v31  ;;  %v765_v5 = vmul.f32 1.442695, %v3473_v18  ;;  %v848_v45 = vsub.f32 %v2841_v7, %v2859_v16  ;;  %v812_v43 = vpop.xlane.xlu1 %811  ;;  %v3474_v41 = vsub.f32 %v2813_v25, %v2832_v53 }
 0x2ec   : > { %941 = vst.msk [vmem:[#allocation4 + $0x58] sm:$0xff] %vm913_vm1, %v2998_v28  ;;  %v883_v59 = vmul.f32 %v1777_v29, %v806_v48  ;;  %1796 = vpow2.f32 %v873_v49  ;;  %v822_v9 = vpop.xlane.xlu0 %821  ;;  %v3475_v13 = vsub.f32 %v2839_v17, %v2859_v16 }
 0x2ed   : > { %v1779_v32 = vpop.eup %1778  ;;  %1798 = vpow2.f32 %v767_v40  ;;  %v861_v63 = vmul.f32 1.442695, %v3474_v41  ;;  %v879_v18 = vmul.f32 1.442695, %v848_v45 }
 0x2ee   : > { %v1781_v27 = vpop.eup %1780  ;;  %v3016_v15 = vadd.f32 %v883_v59, %v787_v56  ;;  %v790_v24 = vmul.f32 %v1779_v32, %v726_v23  ;;  %1800 = vpow2.f32 %v863_v61  ;;  %v783_v29 = vmul.f32 1.442695, %v3475_v13  ;;  %v725_v32 = vld [vmem:[#allocation4 + $0x20] sm:$0xff] }
 0x2ef   : > { %v1783_v38 = vpop.eup %1782  ;;  %v795_v40 = vmul.f32 %v1781_v27, %v731_v21  ;;  %1802 = vpow2.f32 %v765_v5  ;;  %v847_v56 = vsub.f32 %v2855_v14, %v2871_v22  ;;  %v733_v13 = vld [vmem:[#allocation4 + $0x60] sm:$0xff] }
 0x2f0   : > { %v1785_v31 = vpop.eup %1784  ;;  %v886_v49 = vmul.f32 %v1783_v38, %v812_v43  ;;  %932 = vst.msk [vmem:[#allocation4 + $0x10] sm:$0xff] %vm913_vm1, %v3016_v15  ;;  %v734_v38 = vld [vmem:[#allocation4 + $0x68] sm:$0xff]  ;;  %1804 = vpow2.f32 %v861_v63  ;;  %v3476_v43 = vsub.f32 %v2853_v11, %v2871_v22  ;;  %v810_v5 = vpop.xlane.xlu0 %809 }
 0x2f1   : > { %v891_v48 = vmul.f32 %v1785_v31, %v822_v9  ;;  %v1787_v44 = vpop.eup %1786  ;;  %1806 = vpow2.f32 %v783_v29  ;;  %v828_v31 = vpop.xlane.xlu1 %827  ;;  %v728_v29 = vld [vmem:[#allocation4 + $0x38] sm:$0xff] }
 0x2f2   : > { %v3028_v59 = vadd.f32 %v886_v49, %v790_v24  ;;  %v1789_v23 = vpop.eup %1788  ;;  %v781_v27 = vmul.f32 1.442695, %v3476_v43  ;;  %v789_v45 = vmul.f32 %v1787_v44, %v725_v32  ;;  %v877_v49 = vmul.f32 1.442695, %v847_v56 }
 0x2f3   : > { %v3030_v61 = vadd.f32 %v891_v48, %v795_v40  ;;  %v1791_v17 = vpop.eup %1790  ;;  %v798_v9 = vmul.f32 %v1789_v23, %v734_v38  ;;  %1808 = vpow2.f32 %v879_v18 }
 0x2f4   : > { %935 = vst.msk [vmem:[#allocation4 + $0x28] sm:$0xff] %vm913_vm1, %v3028_v59  ;;  %v1793_v21 = vpop.eup %1792  ;;  %v885_v41 = vmul.f32 %v1791_v17, %v810_v5  ;;  %1810 = vpow2.f32 %v781_v27  ;;  %v826_v43 = vpop.xlane.xlu0 %825  ;;  %v727_v17 = vld [vmem:[#allocation4 + $0x30] sm:$0xff] }
 0x2f5   : > { %940 = vst.msk [vmem:[#allocation4 + $0x50] sm:$0xff] %vm913_vm1, %v3030_v61  ;;  %v1795_v24 = vpop.eup %1794  ;;  %v894_v63 = vmul.f32 %v1793_v21, %v828_v31  ;;  %1812 = vpow2.f32 %v877_v49  ;;  %v816_v56 = vpop.xlane.xlu1 %815 }
 0x2f6   : > { %v901_v11 = vadd.f32 %v885_v41, %v789_v45  ;;  %v1797_v40 = vpop.eup %1796  ;;  %v797_v14 = vmul.f32 %v1795_v24, %v733_v13  ;;  %v736_v45 = vld [vmem:[#allocation4 + $0x78] sm:$0xff]  ;;  %1814 = vlog2.f32 (!%p1429_p4), %v2963_v19 }
 0x2f7   : > { %v3039_v48 = vadd.f32 %v894_v63, %v798_v9  ;;  %v1799_v7 = vpop.eup %1798  ;;  %v893_v42 = vmul.f32 %v1797_v40, %v826_v43  ;;  %1816 = vlog2.f32 (!%p1429_p4), %v2945_v4 }
 0x2f8   : > { %934 = vst.msk [vmem:[#allocation4 + $0x20] sm:$0xff] %vm913_vm1, %v901_v11  ;;  %v1801_v44 = vpop.eup %1800  ;;  %v792_v18 = vmul.f32 %v1799_v7, %v728_v29  ;;  %v814_v21 = vpop.xlane.xlu0 %813  ;;  %v735_v7 = vld [vmem:[#allocation4 + $0x70] sm:$0xff]  ;;  %1818 = vlog2.f32 (!%p1429_p4), %v3016_v15 }
 0x2f9   : > { %943 = vst.msk [vmem:[#allocation4 + $0x68] sm:$0xff] %vm913_vm1, %v3039_v48  ;;  %v909_v32 = vadd.f32 %v893_v42, %v797_v14  ;;  %v1803_v23 = vpop.eup %1802  ;;  %v888_v38 = vmul.f32 %v1801_v44, %v816_v56  ;;  %v832_v9 = vpop.xlane.xlu1 %831  ;;  %1820 = vlog2.f32 (!%p1429_p4), %v2975_v26 }
 0x2fa   : > { %v1805_v27 = vpop.eup %1804  ;;  %v791_v41 = vmul.f32 %v1803_v23, %v727_v17  ;;  %1822 = vlog2.f32 (!%p1429_p4), %v901_v11 }
 0x2fb   : > { %942 = vst.msk [vmem:[#allocation4 + $0x60] sm:$0xff] %vm913_vm1, %v909_v32  ;;  %v904_v5 = vadd.f32 %v888_v38, %v792_v18  ;;  %v1807_v31 = vpop.eup %1806  ;;  %v887_v24 = vmul.f32 %v1805_v27, %v814_v21  ;;  %1824 = vlog2.f32 (!%p1429_p4), %v3028_v59 }
 0x2fc   : > { %v800_v14 = vmul.f32 %v1807_v31, %v736_v45  ;;  %v830_v29 = vpop.xlane.xlu0 %829 }
 0x2fd   : > { %937 = vst.msk [vmem:[#allocation4 + $0x38] sm:$0xff] %vm913_vm1, %v904_v5  ;;  %v1809_v49 = vpop.eup %1808  ;;  %v903_v63 = vadd.f32 %v887_v24, %v791_v41 }
 0x2fe   : > { %v1811_v13 = vpop.eup %1810  ;;  %v896_v42 = vmul.f32 %v1809_v49, %v832_v9  ;;  %949 = sbr.rel (%p1429_p4) target bundleno = 792 (0x318), region = 48 }
 0x2ff   : > { %936 = vst.msk [vmem:[#allocation4 + $0x30] sm:$0xff] %vm913_vm1, %v903_v63  ;;  %v1813_v40 = vpop.eup %1812  ;;  %v799_v44 = vmul.f32 %v1811_v13, %v735_v7  ;;  %1826 = vlog2.f32 (!%p1429_p4), %v903_v63 }
 0x300   : > { %v912_v43 = vadd.f32 %v896_v42, %v800_v14  ;;  %v895_v56 = vmul.f32 %v1813_v40, %v830_v29  ;;  %1828 = vlog2.f32 (!%p1429_p4), %v904_v5  ;;  %v1815_v18 = vpop.eup (!%p1429_p4), %1814 }
 0x301   : > { %1830 = vlog2.f32 (!%p1429_p4), %v2988_v46  ;;  %v1817_v19 = vpop.eup (!%p1429_p4), %1816  ;;  %v951_v38 = vmul.f32 (!%p1429_p4), 0.6931472, %v1815_v18 }
 0x302   : > { %945 = vst.msk [vmem:[#allocation4 + $0x78] sm:$0xff] %vm913_vm1, %v912_v43  ;;  %v911_v23 = vadd.f32 %v895_v56, %v799_v44  ;;  %1832 = vlog2.f32 (!%p1429_p4), %v2958_v57  ;;  %v1819_v4 = vpop.eup (!%p1429_p4), %1818  ;;  %v953_v15 = vmul.f32 (!%p1429_p4), 0.6931472, %v1817_v19 }
 0x303   : > { %1834 = vlog2.f32 (!%p1429_p4), %v3030_v61  ;;  %v1821_v26 = vpop.eup (!%p1429_p4), %1820  ;;  %v982_v59 = vadd.f32 (!%p1429_p4), %v951_v38, %v2653_v3  ;;  %v955_v11 = vmul.f32 (!%p1429_p4), 0.6931472, %v1819_v4 }
 0x304   : > { %944 = vst.msk [vmem:[#allocation4 + $0x70] sm:$0xff] %vm913_vm1, %v911_v23  ;;  %1836 = vlog2.f32 (!%p1429_p4), %v2998_v28  ;;  %v1823_v57 = vpop.eup (!%p1429_p4), %1822  ;;  %v983_v46 = vadd.f32 (!%p1429_p4), %v953_v15, %v2625_v54  ;;  %v957_v61 = vmul.f32 (!%p1429_p4), 0.6931472, %v1821_v26 }
 0x305   : > { %1838 = vlog2.f32 %v909_v32  ;;  %v1825_v17 = vpop.eup %1824  ;;  %998 = vst.msk [vmem:[%s2469_s11] sm:$0xff] %vm913_vm1, %v982_v59  ;;  %v984_v28 = vadd.f32 %v955_v11, %v2727_v2  ;;  %v959_v32 = vmul.f32 0.6931472, %v1823_v57 }
 0x306   : > { %1840 = vlog2.f32 %v3039_v48  ;;  %999 = vst.msk [vmem:[%s2469_s11 + $0x8] sm:$0xff] %vm913_vm1, %v983_v46  ;;  %v985_v3 = vadd.f32 %v957_v61, %v2659_v6  ;;  %v961_v48 = vmul.f32 0.6931472, %v1825_v17 }
 0x307   : > { %1842 = vlog2.f32 %v911_v23  ;;  %1000 = vst.msk [vmem:[%s2469_s11 + $0x10] sm:$0xff] %vm913_vm1, %v984_v28  ;;  %v986_v54 = vadd.f32 %v959_v32, %v2773_v8 }
 0x308   : > { %1844 = vlog2.f32 %v912_v43  ;;  %1001 = vst.msk [vmem:[%s2469_s11 + $0x18] sm:$0xff] %vm913_vm1, %v985_v3  ;;  %v987_v2 = vadd.f32 %v961_v48, %v2740_v30 }
 0x309   : > { %v1827_v27 = vpop.eup %1826  ;;  %1002 = vst.msk [vmem:[%s2469_s11 + $0x20] sm:$0xff] %vm913_vm1, %v986_v54 }
 0x30a   : > { %v1829_v5 = vpop.eup %1828  ;;  %v963_v21 = vmul.f32 0.6931472, %v1827_v27  ;;  %1003 = vst.msk [vmem:[%s2469_s11 + $0x28] sm:$0xff] %vm913_vm1, %v987_v2 }
 0x30b   : > { %v1831_v31 = vpop.eup %1830  ;;  %v965_v45 = vmul.f32 0.6931472, %v1829_v5 }
 0x30c   : > { %v1833_v41 = vpop.eup %1832  ;;  %v988_v6 = vadd.f32 %v963_v21, %v2832_v53  ;;  %v967_v24 = vmul.f32 0.6931472, %v1831_v31 }
 0x30d   : > { %v1835_v49 = vpop.eup %1834  ;;  %v989_v8 = vadd.f32 %v965_v45, %v2824_v20  ;;  %v969_v9 = vmul.f32 0.6931472, %v1833_v41 }
 0x30e   : > { %v1837_v63 = vpop.eup %1836  ;;  %1004 = vst.msk [vmem:[%s2469_s11 + $0x30] sm:$0xff] %vm913_vm1, %v988_v6  ;;  %v990_v30 = vadd.f32 %v967_v24, %v2685_v33  ;;  %v971_v13 = vmul.f32 0.6931472, %v1835_v49 }
 0x30f   : > { %v1839_v14 = vpop.eup %1838  ;;  %1005 = vst.msk [vmem:[%s2469_s11 + $0x38] sm:$0xff] %vm913_vm1, %v989_v8  ;;  %v991_v53 = vadd.f32 %v969_v9, %v2619_v52  ;;  %v973_v42 = vmul.f32 0.6931472, %v1837_v63 }
 0x310   : > { %v1841_v7 = vpop.eup %1840  ;;  %1006 = vst.msk [vmem:[%s2469_s11 + $0x40] sm:$0xff] %vm913_vm1, %v990_v30  ;;  %v992_v20 = vadd.f32 %v971_v13, %v2719_v55  ;;  %v975_v40 = vmul.f32 0.6931472, %v1839_v14 }
 0x311   : > { %v1843_v43 = vpop.eup %1842  ;;  %1007 = vst.msk [vmem:[%s2469_s11 + $0x48] sm:$0xff] %vm913_vm1, %v991_v53  ;;  %v993_v33 = vadd.f32 %v973_v42, %v2691_v35  ;;  %v977_v29 = vmul.f32 0.6931472, %v1841_v7 }
 0x312   : > { %v1845_v44 = vpop.eup %1844  ;;  %1008 = vst.msk [vmem:[%s2469_s11 + $0x50] sm:$0xff] %vm913_vm1, %v992_v20  ;;  %v994_v52 = vadd.f32 %v975_v40, %v2809_v12  ;;  %v979_v56 = vmul.f32 0.6931472, %v1843_v43 }
 0x313   : > { %1009 = vst.msk [vmem:[%s2469_s11 + $0x58] sm:$0xff] %vm913_vm1, %v993_v33  ;;  %v995_v23 = vadd.f32 %v977_v29, %v2778_v34  ;;  %v981_v55 = vmul.f32 0.6931472, %v1845_v44 }
 0x314   : > { %1010 = vst.msk [vmem:[%s2469_s11 + $0x60] sm:$0xff] %vm913_vm1, %v994_v52  ;;  %v996_v18 = vadd.f32 %v979_v56, %v2871_v22 }
 0x315   : > { %1011 = vst.msk [vmem:[%s2469_s11 + $0x68] sm:$0xff] %vm913_vm1, %v995_v23  ;;  %v997_v35 = vadd.f32 %v981_v55, %v2859_v16 }
 0x316   : > { %1012 = vst.msk [vmem:[%s2469_s11 + $0x70] sm:$0xff] %vm913_vm1, %v996_v18 }
 0x317   : > { %1013 = vst.msk [vmem:[%s2469_s11 + $0x78] sm:$0xff] %vm913_vm1, %v997_v35 }
 0x318 PF: > { %1014 = vst [vmem:[%s309_s18] sm:$0x1] %v2607_v47  ;;  %1036 = vmin.xlane.f32.xlu0 %v2607_v47  ;;  %v1015_v12 = vmax.f32 %v2643_v62, %v2723_v1  ;;  %v1016_v34 = vmax.f32 %v2615_v51, %v2721_v58  ;;  %v1017_v16 = vmax.f32 %v2695_v37, %v2813_v25  ;;  %v3477_v15 = vld [vmem:[#allocation39_spill] sm:$0xff]  ;;  %v3478_v11 = vld [vmem:[#allocation42_spill] sm:$0xff]  ;;  %v3479_v46 = vld [vmem:[#allocation48_spill] sm:$0xff]  ;;  %vm1039_vm2 = vcmask 0  }
 0x319   : > { %v1018_v22 = vmax.f32 %v2647_v0, %v2795_v60  ;;  %v3480_v17 = vld [vmem:[#allocation47_spill] sm:$0xff] }
 0x31a   : > { %v1019_v19 = vmax.f32 %v1015_v12, %v2669_v10  ;;  %v1020_v38 = vmax.f32 %v1016_v34, %v2613_v50  ;;  %v1021_v4 = vmax.f32 %v1017_v16, %v2693_v36 }
 0x31b   : > { %v1022_v26 = vmax.f32 %v1018_v22, %v3477_v15 }
 0x31c   : > { %v1023_v59 = vmax.f32 %v1019_v19, %v2764_v39  ;;  %v1024_v57 = vmax.f32 %v1020_v38, %v3478_v11  ;;  %v1025_v61 = vmax.f32 %v1021_v4, %v3479_v46 }
 0x31d   : > { %v1026_v28 = vmax.f32 %v1022_v26, %v3480_v17 }
 0x31e   : > { %v1027_v32 = vmax.f32 %v1023_v59, %v1024_v57 }
 0x31f   : > { %v1028_v27 = vmax.f32 %v1025_v61, %v1026_v28 }
 0x321   : > { %v1029_v3 = vmax.f32 %v1027_v32, %v1028_v27 }
 0x323   : > { %v1030_v48 = vrot.slane %v1029_v3, 4 }
 0x325   : > { %v1031_v5 = vmax.f32 %v1029_v3, %v1030_v48 }
 0x327   : > { %v1032_v54 = vrot.slane %v1031_v5, 2 }
 0x329   : > { %v1033_v21 = vmax.f32 %v1031_v5, %v1032_v54 }
 0x32b   : > { %v1034_v31 = vrot.slane %v1033_v21, 1 }
 0x32d   : > { %v3128_v2 = vmax.f32 %v1033_v21, %v1034_v31 }
 0x3a5   : > { %v1037_v45 = vpop.xlane.xlu0 %1036 }
 0x3a6   : > { %v1038_v41 = vsub.f32 %v3128_v2, %v1037_v45 }
 0x3a8   : > { %1040 = vst.msk [vmem:[#allocation5] sm:$0x1] %vm1039_vm2, %v1038_v41 }
 0x3af   : > { %v1041_v6 = vld [vmem:[#allocation5] sm:$0x1] }
 0x3b0   : > { %1574 = vpush %v1041_v6 }
 0x3e1   : > { %s1575_s13 = spop %1574 }
 0x3e2   : > { %p1043_p12 = scmp.lt.f32.partialorder %s1575_s13, 80.0 }
 0x3e3   : > { %v1047_v24 = vsub.f32 (%p1043_p12), %v2643_v62, %v3128_v2  ;;  %v1048_v49 = vsub.f32 (%p1043_p12), %v2615_v51, %v3128_v2  ;;  %v1049_v8 = vsub.f32 (%p1043_p12), %v2695_v37, %v3128_v2  ;;  %v1050_v9 = vsub.f32 (%p1043_p12), %v2647_v0, %v3128_v2  ;;  %v3483_v55 = vld [vmem:[#allocation40_spill] sm:$0xff] (%p1043_p12)  ;;  %v3484_v35 = vld [vmem:[#allocation42_spill] sm:$0xff] (%p1043_p12)  ;;  %v3485_v16 = vld [vmem:[#allocation49_spill] sm:$0xff] (%p1043_p12) }
 0x3e4   : > { %1046 = sbr.rel (!%p1043_p12) target bundleno = 1058 (0x422), region = 52  ;;  %v1051_v63 = vsub.f32 (%p1043_p12), %v2723_v1, %v3128_v2  ;;  %v1052_v30 = vsub.f32 (%p1043_p12), %v2721_v58, %v3128_v2  ;;  %v1053_v62 = vsub.f32 (%p1043_p12), %v2813_v25, %v3128_v2  ;;  %v1054_v37 = vsub.f32 (%p1043_p12), %v2795_v60, %v3128_v2  ;;  %v3481_v60 = vld [vmem:[#allocation39_spill] sm:$0xff] (%p1043_p12)  ;;  %v3486_v38 = vld [vmem:[#allocation44_spill] sm:$0xff] (%p1043_p12)  ;;  %v3490_v3 = vld [vmem:[#allocation50_spill] sm:$0xff] (%p1043_p12) }
 0x3e5   : > { %v1063_v13 = vmul.f32 (%p1043_p12), 1.442695, %v1047_v24  ;;  %v1065_v14 = vmul.f32 (%p1043_p12), 1.442695, %v1048_v49  ;;  %v1067_v53 = vmul.f32 (%p1043_p12), 1.442695, %v1049_v8  ;;  %v1055_v1 = vsub.f32 (%p1043_p12), %v2669_v10, %v3128_v2 }
 0x3e6   : > { %v1069_v42 = vmul.f32 (%p1043_p12), 1.442695, %v1050_v9  ;;  %v1071_v51 = vmul.f32 (%p1043_p12), 1.442695, %v1051_v63  ;;  %v1073_v0 = vmul.f32 (%p1043_p12), 1.442695, %v1052_v30  ;;  %v1056_v7 = vsub.f32 (%p1043_p12), %v2613_v50, %v3128_v2 }
 0x3e7   : > { %1846 = vpow2.f32 (%p1043_p12), %v1063_v13  ;;  %v1075_v58 = vmul.f32 (%p1043_p12), 1.442695, %v1053_v62  ;;  %v1077_v25 = vmul.f32 (%p1043_p12), 1.442695, %v1054_v37  ;;  %v1057_v20 = vsub.f32 (%p1043_p12), %v2693_v36, %v3128_v2  ;;  %v3482_v50 = vld [vmem:[#allocation43_spill] sm:$0xff] (%p1043_p12)  ;;  %v3487_v26 = vld [vmem:[#allocation48_spill] sm:$0xff] (%p1043_p12) }
 0x3e8   : > { %1848 = vpow2.f32 (%p1043_p12), %v1065_v14  ;;  %v1079_v40 = vmul.f32 (%p1043_p12), 1.442695, %v1055_v1  ;;  %v1058_v43 = vsub.f32 (%p1043_p12), %v3481_v60, %v3128_v2  ;;  %v1081_v33 = vmul.f32 (%p1043_p12), 1.442695, %v1056_v7  ;;  %v3488_v57 = vld [vmem:[#allocation52_spill] sm:$0xff] (%p1043_p12)  ;;  %v3489_v28 = vld [vmem:[#allocation47_spill] sm:$0xff] (%p1043_p12) }
 0x3e9   : > { %1850 = vpow2.f32 (%p1043_p12), %v1067_v53  ;;  %v1059_v44 = vsub.f32 (%p1043_p12), %v2764_v39, %v3128_v2  ;;  %v1083_v52 = vmul.f32 (%p1043_p12), 1.442695, %v1057_v20  ;;  %v1060_v12 = vsub.f32 (%p1043_p12), %v3484_v35, %v3128_v2  ;;  %v3491_v31 = vld [vmem:[#allocation56_spill] sm:$0xff] (%p1043_p12)  ;;  %v3492_v49 = vld [vmem:[#allocation55_spill] sm:$0xff] (%p1043_p12)  ;;  %v3493_v30 = vld [vmem:[#allocation45_spill] sm:$0xff] (%p1043_p12) }
 0x3ea   : > { %1852 = vpow2.f32 (%p1043_p12), %v1069_v42  ;;  %v1085_v34 = vmul.f32 (%p1043_p12), 1.442695, %v1058_v43  ;;  %v1061_v59 = vsub.f32 (%p1043_p12), %v3487_v26, %v3128_v2  ;;  %v1062_v32 = vsub.f32 (%p1043_p12), %v3489_v28, %v3128_v2  ;;  %v3494_v62 = vld [vmem:[#allocation41_spill] sm:$0xff] (%p1043_p12)  ;;  %v3497_v43 = vld [vmem:[#allocation54_spill] sm:$0xff] (%p1043_p12) }
 0x3eb   : > { %1854 = vpow2.f32 %v1071_v51  ;;  %v1087_v11 = vmul.f32 1.442695, %v1059_v44  ;;  %v1089_v27 = vmul.f32 1.442695, %v1060_v12  ;;  %v3498_v44 = vld [vmem:[#allocation53_spill] sm:$0xff] }
 0x3ec   : > { %1856 = vpow2.f32 %v1073_v0  ;;  %v1091_v21 = vmul.f32 1.442695, %v1061_v59  ;;  %v1093_v24 = vmul.f32 1.442695, %v1062_v32  ;;  %v3495_v0 = vld [vmem:[#allocation51_spill] sm:$0xff]  ;;  %v3500_v35 = vld [vmem:[#allocation57_spill] sm:$0xff] }
 0x3ed   : > { %1858 = vpow2.f32 %v1075_v58 }
 0x3ee   : > { %1860 = vpow2.f32 %v1077_v25  ;;  %v3496_v25 = vld [vmem:[#allocation46_spill] sm:$0xff] }
 0x3ef   : > { %1862 = vpow2.f32 %v1079_v40 }
 0x3f0   : > { %1864 = vpow2.f32 %v1081_v33 }
 0x3f1   : > { %v1847_v29 = vpop.eup %1846  ;;  %1866 = vpow2.f32 %v1083_v52 }
 0x3f2   : > { %v1849_v10 = vpop.eup %1848  ;;  %v1095_v56 = vmul.f32 %v1847_v29, %v3482_v50  ;;  %1868 = vpow2.f32 %v1085_v34 }
 0x3f3   : > { %v1851_v23 = vpop.eup %1850  ;;  %v1096_v18 = vmul.f32 %v1849_v10, %v3483_v55  ;;  %1870 = vpow2.f32 %v1087_v11  ;;  %v3499_v55 = vld [vmem:[#allocation58_spill] sm:$0xff] }
 0x3f4   : > { %v1853_v36 = vpop.eup %1852  ;;  %v1097_v22 = vmul.f32 %v1851_v23, %v3485_v16  ;;  %1872 = vpow2.f32 %v1089_v27  ;;  %v1132_v23 = vsub.f32 %v3128_v2, %v2607_v47 }
 0x3f5   : > { %v1855_v19 = vpop.eup %1854  ;;  %v1098_v4 = vmul.f32 %v1853_v36, %v3486_v38  ;;  %v1111_v15 = vadd.f32 %v1096_v18, %v1095_v56  ;;  %1874 = vpow2.f32 %v1091_v21 }
 0x3f6   : > { %v1857_v39 = vpop.eup %1856  ;;  %v1099_v46 = vmul.f32 %v1855_v19, %v3488_v57  ;;  %1876 = vpow2.f32 %v1093_v24  ;;  %v1133_v16 = vmul.f32 1.442695, %v1132_v23 }
 0x3f7   : > { %v1112_v61 = vadd.f32 %v1111_v15, %v1097_v22  ;;  %v1859_v17 = vpop.eup %1858  ;;  %v1100_v48 = vmul.f32 %v1857_v39, %v3490_v3 }
 0x3f8   : > { %v1861_v54 = vpop.eup %1860  ;;  %v1101_v45 = vmul.f32 %v1859_v17, %v3491_v31  ;;  %1878 = vpow2.f32 %v1133_v16 }
 0x3f9   : > { %v1113_v5 = vadd.f32 %v1112_v61, %v1098_v4  ;;  %v1863_v6 = vpop.eup %1862  ;;  %v1102_v8 = vmul.f32 %v1861_v54, %v3492_v49 }
 0x3fa   : > { %v1865_v63 = vpop.eup %1864  ;;  %v1103_v13 = vmul.f32 %v1863_v6, %v3493_v30 }
 0x3fb   : > { %v1114_v41 = vadd.f32 %v1113_v5, %v1099_v46  ;;  %v1867_v53 = vpop.eup %1866  ;;  %v1104_v42 = vmul.f32 %v1865_v63, %v3494_v62 }
 0x3fc   : > { %v1869_v37 = vpop.eup %1868  ;;  %v1105_v1 = vmul.f32 %v1867_v53, %v3495_v0 }
 0x3fd   : > { %v1115_v9 = vadd.f32 %v1114_v41, %v1100_v48  ;;  %v1871_v7 = vpop.eup %1870  ;;  %v1106_v20 = vmul.f32 %v1869_v37, %v3496_v25 }
 0x3fe   : > { %v1873_v60 = vpop.eup %1872  ;;  %v1107_v33 = vmul.f32 %v1871_v7, %v3497_v43 }
 0x3ff   : > { %v1116_v14 = vadd.f32 %v1115_v9, %v1101_v45  ;;  %v1875_v10 = vpop.eup %1874  ;;  %v1108_v52 = vmul.f32 %v1873_v60, %v3498_v44 }
 0x400   : > { %v1877_v56 = vpop.eup %1876  ;;  %v1109_v18 = vmul.f32 %v1875_v10, %v3499_v55 }
 0x401   : > { %v1117_v51 = vadd.f32 %v1116_v14, %v1102_v8  ;;  %v1110_v12 = vmul.f32 %v1877_v56, %v3500_v35 }
 0x402   : > { %v1879_v59 = vpop.eup %1878 }
 0x403   : > { %v1118_v58 = vadd.f32 %v1117_v51, %v1103_v13 }
 0x405   : > { %v1119_v40 = vadd.f32 %v1118_v58, %v1104_v42 }
 0x407   : > { %v1120_v29 = vadd.f32 %v1119_v40, %v1105_v1 }
 0x409   : > { %v1121_v50 = vadd.f32 %v1120_v29, %v1106_v20 }
 0x40b   : > { %v1122_v36 = vadd.f32 %v1121_v50, %v1107_v33 }
 0x40d   : > { %v1123_v34 = vadd.f32 %v1122_v36, %v1108_v52 }
 0x40f   : > { %v1124_v22 = vadd.f32 %v1123_v34, %v1109_v18 }
 0x411   : > { %v1125_v19 = vadd.f32 %v1124_v22, %v1110_v12 }
 0x413   : > { %v1126_v38 = vrot.slane %v1125_v19, 4 }
 0x415   : > { %v1127_v4 = vadd.f32 %v1126_v38, %v1125_v19 }
 0x417   : > { %v1128_v15 = vrot.slane %v1127_v4, 2 }
 0x419   : > { %v1129_v39 = vadd.f32 %v1128_v15, %v1127_v4 }
 0x41b   : > { %v1130_v26 = vrot.slane %v1129_v39, 1 }
 0x41d   : > { %v1131_v11 = vadd.f32 %v1130_v26, %v1129_v39 }
 0x41f   : > { %v1135_v57 = vmul.f32 %v1879_v59, %v1131_v11 }
 0x421   : > { %1136 = vst [vmem:[%s2473_s4] sm:$0x1] %v1135_v57 }
 0x422 PF: > { %v1137_v2 = vld [vmem:[#allocation5] sm:$0x1] }
 0x423   : > { %1576 = vpush %v1137_v2 }
 0x454   : > { %s1577_s10 = spop %1576 }
 0x455   : > { %p1139_p3 = scmp.ge.f32.partialorder %s1577_s10, 80.0 }
 0x456   : > { %v3501_v46 = vld [vmem:[#allocation26_spill] sm:$0xff] (%p1139_p3)  ;;  %v3502_v17 = vld [vmem:[#allocation23_spill] sm:$0xff] (%p1139_p3)  ;;  %v3503_v32 = vld [vmem:[#allocation29_spill] sm:$0xff] (%p1139_p3) }
 0x457   : > { %1142 = sbr.rel (!%p1139_p3) target bundleno = 1170 (0x492), region = 56  ;;  %v1143_v61 = vsub.f32 (%p1139_p3), %v3501_v46, %v2607_v47  ;;  %v1144_v28 = vsub.f32 (%p1139_p3), %v3502_v17, %v2607_v47  ;;  %v1145_v27 = vsub.f32 (%p1139_p3), %v3503_v32, %v2607_v47  ;;  %v3504_v3 = vld [vmem:[#allocation27_spill] sm:$0xff] (%p1139_p3)  ;;  %v3505_v5 = vld [vmem:[#allocation33_spill] sm:$0xff] (%p1139_p3)  ;;  %v3510_v42 = vld [vmem:[#allocation24_spill] sm:$0xff] (%p1139_p3) }
 0x458   : > { %v1146_v48 = vsub.f32 (%p1139_p3), %v3504_v3, %v2607_v47  ;;  %v1147_v54 = vsub.f32 (%p1139_p3), %v3505_v5, %v2607_v47  ;;  %v3506_v41 = vld [vmem:[#allocation31_spill] sm:$0xff] (%p1139_p3)  ;;  %v3507_v49 = vld [vmem:[#allocation37_spill] sm:$0xff] (%p1139_p3)  ;;  %v1152_v51 = vsub.f32 (%p1139_p3), %v3510_v42, %v2607_v47  ;;  %v3511_v0 = vld [vmem:[#allocation30_spill] sm:$0xff] (%p1139_p3) }
 0x459   : > { %v1159_v21 = vmul.f32 (%p1139_p3), 1.442695, %v1143_v61  ;;  %v1161_v31 = vmul.f32 (%p1139_p3), 1.442695, %v1144_v28  ;;  %v1163_v45 = vmul.f32 (%p1139_p3), 1.442695, %v1145_v27  ;;  %v1148_v6 = vsub.f32 (%p1139_p3), %v3506_v41, %v2607_v47 }
 0x45a   : > { %v1165_v24 = vmul.f32 (%p1139_p3), 1.442695, %v1146_v48  ;;  %v1149_v8 = vsub.f32 (%p1139_p3), %v3507_v49, %v2607_v47  ;;  %v1167_v9 = vmul.f32 (%p1139_p3), 1.442695, %v1147_v54  ;;  %v3508_v63 = vld [vmem:[#allocation35_spill] sm:$0xff] (%p1139_p3)  ;;  %v3509_v14 = vld [vmem:[#allocation25_spill] sm:$0xff] (%p1139_p3)  ;;  %v1153_v1 = vsub.f32 (%p1139_p3), %v3511_v0, %v2607_v47 }
 0x45b   : > { %1880 = vpow2.f32 (%p1139_p3), %v1159_v21  ;;  %v1150_v30 = vsub.f32 (%p1139_p3), %v3508_v63, %v2607_v47  ;;  %v1169_v13 = vmul.f32 (%p1139_p3), 1.442695, %v1148_v6  ;;  %v1151_v53 = vsub.f32 (%p1139_p3), %v3509_v14, %v2607_v47  ;;  %v3512_v20 = vld [vmem:[#allocation28_spill] sm:$0xff] (%p1139_p3)  ;;  %v3513_v10 = vld [vmem:[#allocation34_spill] sm:$0xff] (%p1139_p3) }
 0x45c   : > { %1882 = vpow2.f32 (%p1139_p3), %v1161_v31  ;;  %v1171_v62 = vmul.f32 (%p1139_p3), 1.442695, %v1149_v8  ;;  %v1154_v40 = vsub.f32 (%p1139_p3), %v3512_v20, %v2607_v47  ;;  %v1177_v60 = vmul.f32 (%p1139_p3), 1.442695, %v1152_v51  ;;  %v3514_v23 = vld [vmem:[#allocation32_spill] sm:$0xff] (%p1139_p3)  ;;  %v3515_v12 = vld [vmem:[#allocation38_spill] sm:$0xff] (%p1139_p3) }
 0x45d   : > { %1884 = vpow2.f32 (%p1139_p3), %v1163_v45  ;;  %v1173_v37 = vmul.f32 (%p1139_p3), 1.442695, %v1150_v30  ;;  %v1175_v58 = vmul.f32 (%p1139_p3), 1.442695, %v1151_v53  ;;  %v1155_v44 = vsub.f32 (%p1139_p3), %v3513_v10, %v2607_v47  ;;  %v3516_v38 = vld [vmem:[#allocation36_spill] sm:$0xff] (%p1139_p3) }
 0x45e   : > { %1886 = vpow2.f32 %v1165_v24  ;;  %v1179_v52 = vmul.f32 1.442695, %v1153_v1  ;;  %v1156_v55 = vsub.f32 %v3514_v23, %v2607_v47  ;;  %v1181_v18 = vmul.f32 1.442695, %v1154_v40 }
 0x45f   : > { %1888 = vpow2.f32 %v1167_v9  ;;  %v1157_v34 = vsub.f32 %v3515_v12, %v2607_v47  ;;  %v1183_v16 = vmul.f32 1.442695, %v1155_v44  ;;  %v1158_v4 = vsub.f32 %v3516_v38, %v2607_v47 }
 0x460   : > { %1890 = vpow2.f32 %v1169_v13  ;;  %v1185_v15 = vmul.f32 1.442695, %v1156_v55 }
 0x461   : > { %1892 = vpow2.f32 %v1171_v62  ;;  %v1187_v59 = vmul.f32 1.442695, %v1157_v34  ;;  %v1189_v2 = vmul.f32 1.442695, %v1158_v4 }
 0x462   : > { %1894 = vpow2.f32 %v1173_v37 }
 0x463   : > { %1896 = vpow2.f32 %v1175_v58 }
 0x464   : > { %1898 = vpow2.f32 %v1177_v60 }
 0x465   : > { %v1881_v7 = vpop.eup %1880  ;;  %1900 = vpow2.f32 %v1179_v52 }
 0x466   : > { %v1883_v25 = vpop.eup %1882  ;;  %1902 = vpow2.f32 %v1181_v18 }
 0x467   : > { %v1885_v43 = vpop.eup %1884  ;;  %v1191_v33 = vadd.f32 %v1883_v25, %v1881_v7  ;;  %1904 = vpow2.f32 %v1183_v16 }
 0x468   : > { %v1887_v29 = vpop.eup %1886  ;;  %1906 = vpow2.f32 %v1185_v15 }
 0x469   : > { %v1192_v50 = vadd.f32 %v1885_v43, %v1191_v33  ;;  %v1889_v56 = vpop.eup %1888  ;;  %1908 = vpow2.f32 %v1187_v59 }
 0x46a   : > { %v1891_v35 = vpop.eup %1890  ;;  %1910 = vpow2.f32 %v1189_v2 }
 0x46b   : > { %v1193_v36 = vadd.f32 %v1887_v29, %v1192_v50  ;;  %v1893_v19 = vpop.eup %1892 }
 0x46c   : > { %v1895_v26 = vpop.eup %1894 }
 0x46d   : > { %v1194_v22 = vadd.f32 %v1889_v56, %v1193_v36  ;;  %v1897_v57 = vpop.eup %1896 }
 0x46e   : > { %v1899_v61 = vpop.eup %1898 }
 0x46f   : > { %v1195_v39 = vadd.f32 %v1891_v35, %v1194_v22  ;;  %v1901_v28 = vpop.eup %1900 }
 0x470   : > { %v1903_v27 = vpop.eup %1902 }
 0x471   : > { %v1196_v11 = vadd.f32 %v1893_v19, %v1195_v39  ;;  %v1905_v47 = vpop.eup %1904 }
 0x472   : > { %v1907_v5 = vpop.eup %1906 }
 0x473   : > { %v1197_v46 = vadd.f32 %v1895_v26, %v1196_v11  ;;  %v1909_v21 = vpop.eup %1908 }
 0x474   : > { %v1911_v45 = vpop.eup %1910 }
 0x475   : > { %v1198_v17 = vadd.f32 %v1897_v57, %v1197_v46 }
 0x477   : > { %v1199_v32 = vadd.f32 %v1899_v61, %v1198_v17 }
 0x479   : > { %v1200_v3 = vadd.f32 %v1901_v28, %v1199_v32 }
 0x47b   : > { %v1201_v48 = vadd.f32 %v1903_v27, %v1200_v3 }
 0x47d   : > { %v1202_v54 = vadd.f32 %v1905_v47, %v1201_v48 }
 0x47f   : > { %v1203_v31 = vadd.f32 %v1907_v5, %v1202_v54 }
 0x481   : > { %v1204_v41 = vadd.f32 %v1909_v21, %v1203_v31 }
 0x483   : > { %v1205_v6 = vadd.f32 %v1911_v45, %v1204_v41 }
 0x485   : > { %v1206_v24 = vrot.slane %v1205_v6, 4 }
 0x487   : > { %v1207_v49 = vadd.f32 %v1206_v24, %v1205_v6 }
 0x489   : > { %v1208_v8 = vrot.slane %v1207_v49, 2 }
 0x48b   : > { %v1209_v9 = vadd.f32 %v1208_v8, %v1207_v49 }
 0x48d   : > { %v1210_v63 = vrot.slane %v1209_v9, 1 }
 0x48f   : > { %v1211_v30 = vadd.f32 %v1210_v63, %v1209_v9 }
 0x491   : > { %1212 = vst [vmem:[%s2473_s4] sm:$0x1] %v1211_v30 }
 0x492 PF: > { %s1430_s30 = sshll.u32 %s2142_s29, 1  ;;  %s1241_s1 = sshll.u32 %s309_s18, 4  ;;  %s3222_s1 = int_to_ptr.vmem [resolvable:$true] %s1241_s1 }
 0x493   : > { %s3217_s16 = sadd.s32 %s2138_s28, %s1430_s30  ;;  %s3517_s0 = sld [smem:[#allocation62_spill]] }
 0x494   : > { %s3380_s12 = sshll.u32 %s3217_s16, 4  ;;  %s1219_s13 = scalar_lea.sflag [#allocation9], %s2463_s14 }
 0x495   : > { %s1972_s10 = scalar_lea.vmem %s3222_s1, 16  ;;  %p3519_p11 = scmp.ne.s32.totalorder %s3399_s17, 0 }
 0x496   : > { %p1973_p2 = scmp.ne.s32.totalorder %s3222_s1, %s1972_s10  ;;  %s2162_s28 = smov [#allocation12]  }
 0x497   : > { %s1976_s29 = sshll.u32 %s2162_s28, 4  ;;  %s1977_s29 = int_to_ptr.vmem [resolvable:$false] %s1976_s29 }
 0x498   : > { %p1974_p8 = pnand %p1973_p2, %p3519_p11  ;;  %s1978_s18 = scalar_lea.vmem %s1977_s29, 32 }
 0x499   : > { %s3518_s11 = smov %s3517_s0  ;;  %s1239_s23 = scalar_lea.hbm %s3517_s0, %s3380_s12 }
 0x49a   : > { %p1975_p0 = pneg %p1974_p8  ;;  %p1979_p1 = scmp.lt.s32.totalorder %s3222_s1, %s1977_s29 }
 0x49b   : > { %p1980_p5 = scmp.lt.s32.totalorder %s1978_s18, %s1972_s10 }
 0x49d   : > { %p1981_p7 = por %p1980_p5, %p1979_p1 }
 0x49f   : > { %p1982_p10 = pnand %p1981_p7, %p1975_p0 }
 0x4a1   : > { %1985 = shalt.err (!%p1982_p10)
}
 0x4a2   : > { %s1986_s30 = scalar_lea.hbm %s1239_s23, 16  ;;  %s1990_s0 = scalar_lea.hbm %s3518_s11, 64 }
 0x4a3   : > { %p1987_p9 = scmp.ne.s32.totalorder %s1239_s23, %s1986_s30  ;;  %p1991_p4 = scmp.lt.u32.totalorder %s1239_s23, %s3518_s11 }
 0x4a4   : > { %p1992_p12 = scmp.lt.u32.totalorder %s1990_s0, %s1986_s30  ;;  %p1994_p2 = scmp.lt.u32.totalorder %s1986_s30, %s1239_s23 }
 0x4a5   : > { %p1988_p13 = pnand %p1987_p9, %p3519_p11 }
 0x4a6   : > { %p1993_p3 = por %p1992_p12, %p1991_p4 }
 0x4a7   : > { %p1989_p6 = pneg %p1988_p13 }
 0x4a8   : > { %p1995_p8 = por %p1994_p2, %p1993_p3 }
 0x4aa   : > { %p1996_p0 = pnand %p1995_p8, %p1989_p6 }
 0x4ac   : > { %1999 = shalt.err (!%p1996_p0)
}
 0x4ad   : > { %1582 = dma.vmem_to_hbm [thread:$0]  (%p3519_p11), %s3222_s1, 16, %s1239_s23, %s1219_s13  }
 0x4ae   : > { %s3520_s10 = sshll.u32 %s3217_s16, 4  ;;  %s3521_s18 = sld [smem:[#allocation63_spill]] }
 0x4af   : > { %s1256_s12 = sshll.u32 %s2473_s4, 4  ;;  %s1223_s30 = scalar_lea.sflag [#allocation14], %s2463_s14  ;;  %s1257_s12 = int_to_ptr.vmem [resolvable:$true] %s1256_s12 }
 0x4b0   : > { %s2000_s8 = scalar_lea.vmem %s1257_s12, 16  ;;  %s2163_s6 = smov [#allocation13]  }
 0x4b1   : > { %p2001_p1 = scmp.ne.s32.totalorder %s1257_s12, %s2000_s8  ;;  %s2004_s0 = sshll.u32 %s2163_s6, 4  ;;  %s2005_s0 = int_to_ptr.vmem [resolvable:$false] %s2004_s0 }
 0x4b2   : > { %s2006_s3 = scalar_lea.vmem %s2005_s0, 32  ;;  %p2007_p10 = scmp.lt.s32.totalorder %s1257_s12, %s2005_s0 }
 0x4b3   : > { %p2002_p5 = pnand %p2001_p1, %p3519_p11  ;;  %p2008_p9 = scmp.lt.s32.totalorder %s2006_s3, %s2000_s8 }
 0x4b4   : > { %s3251_s2 = scalar_lea.hbm %s3521_s18, %s3520_s10 }
 0x4b5   : > { %p2003_p7 = pneg %p2002_p5  ;;  %p2009_p13 = por %p2008_p9, %p2007_p10 }
 0x4b7   : > { %p2010_p6 = pnand %p2009_p13, %p2003_p7 }
 0x4b9   : > { %2013 = shalt.err (!%p2010_p6)
}
 0x4ba   : > { %s2014_s14 = scalar_lea.hbm %s3251_s2, 16  ;;  %s2018_s1 = scalar_lea.hbm %s3521_s18, 64 }
 0x4bb   : > { %p2015_p4 = scmp.ne.s32.totalorder %s3251_s2, %s2014_s14  ;;  %p2019_p2 = scmp.lt.u32.totalorder %s3251_s2, %s3521_s18 }
 0x4bc   : > { %p2020_p8 = scmp.lt.u32.totalorder %s2018_s1, %s2014_s14  ;;  %p2022_p1 = scmp.lt.u32.totalorder %s2014_s14, %s3251_s2 }
 0x4bd   : > { %p2016_p12 = pnand %p2015_p4, %p3519_p11 }
 0x4be   : > { %p2021_p0 = por %p2020_p8, %p2019_p2 }
 0x4bf   : > { %p2017_p3 = pneg %p2016_p12 }
 0x4c0   : > { %p2023_p5 = por %p2022_p1, %p2021_p0 }
 0x4c2   : > { %p2024_p7 = pnand %p2023_p5, %p2017_p3 }
 0x4c4   : > { %2027 = shalt.err (!%p2024_p7)
}
 0x4c5   : > { %1583 = dma.vmem_to_hbm [thread:$0]  (%p3519_p11), %s1257_s12, 16, %s3251_s2, %s1223_s30  }
 0x4c6 PF: > { %p1601_p10 = scmp.ge.s32.totalorder %s2154_s7, 2  ;;  %s1276_s3 = sand.u32 1, %s2102_s20  }
 0x4c7   : > { %p3522_p9 = scmp.ne.s32.totalorder %s3402_s9, 0  ;;  %s1277_s10 = scalar_lea.sflag [#allocation9], %s1276_s3 }
 0x4c9   : > { %p1594_p13 = pnand %p1601_p10, %p3522_p9 }
 0x4cb   : > { %2093 = dma.done.wait (!%p1594_p13), %s1277_s10, 16  }
 0x4cc   : > { %2095 = vsyncadd (!%p1594_p13), %s1277_s10, 4294967280  ;;  %s1285_s28 = scalar_lea.sflag [#allocation14], %s1276_s3 }
 0x4cd   : > { %2097 = dma.done.wait (!%p1594_p13), %s1285_s28, 16  }
 0x4ce   : > { %2099 = vsyncadd (!%p1594_p13), %s1285_s28, 4294967280  ;;  %s29_s7 = sadd.s32 1, %s2154_s7   ;;  %s3524_s28 = sld [smem:[#allocation19_spill]] }
 0x4cf   : > { %p3277_p6 = scmp.ge.s32.totalorder %s29_s7, 6   ;;  %s3525_s29 = sld [smem:[#allocation20_spill]] }
 0x4d0   : > { %s3526_s30 = sld [smem:[#allocation21_spill]]  ;;  %s3527_s6 = sld [smem:[#allocation22_spill]] }
 0x4d1   : > { %s3528_s20 = smov %s2106_s21  ;;  %s3529_s21 = smov %s2110_s22 }
 0x4d2   : > { %s3530_s22 = smov %s2389_s5  ;;  %s3531_s23 = smov %s2118_s24 }
 0x4d3   : > { %s3532_s24 = smov %s2122_s25  ;;  %s3533_s25 = smov %s2371_s19 }
 0x4d4   : > { %s3534_s0 = smov %s2130_s26  ;;  %s3535_s26 = smov %s2134_s27 }
 0x4d5   : > { %s3536_s27 = smov %s2386_s15  ;;  %28 = sbr.rel (!%p3277_p6) target bundleno = 21 (0x15), region = 135 }
 0x4dc   :  { %1289 = vsyncpa [#allocation8], 1 }
 0x4dd   :  { %1291 = vsyncpa [#allocation8 + $0x1], 1 }
 0x4de   :  { %1292 = vsyncpa [#allocation11], 1 }
 0x4df   :  { %1294 = vsyncpa [#allocation11 + $0x1], 1 }
 0x4e0   :  { %1295 = vsyncpa [#allocation9], 1 }
 0x4e1   :  { %1297 = vsyncpa [#allocation9 + $0x1], 1 }
 0x4e2   :  { %1298 = vsyncpa [#allocation14], 1 }
 0x4e3   :  { %1300 = vsyncpa [#allocation14 + $0x1], 1 }

</bundles_post_ra>
